<compile_context>
chip_gen: v7x
topology: tpu7x:2x2x1
jax: 0.10.0
libtpu: 0.0.40
codegen_flags: <defaults>
</compile_context>

<pallas_src>
import functools

import jax
import jax.numpy as jnp
from jax.experimental import pallas as pl
from jax.experimental.pallas import tpu as pltpu


# ----------------------------------------------------------------------------
# Padding helpers (zero padding; padded hidden lanes remain exactly zero).
# ----------------------------------------------------------------------------
def _round_up(x, m):
    return (x + m - 1) // m * m


def _pad_axis(a, axis, new_size):
    pad = [(0, 0)] * a.ndim
    pad[axis] = (0, new_size - a.shape[axis])
    return jnp.pad(a, pad)


def _pad_gates_last(a, H, H_pad):
    """(..., 3H) with gate order [r|z|n] -> (..., 3*H_pad), each gate zero-padded."""
    parts = []
    for g in range(3):
        parts.append(_pad_axis(a[..., g * H:(g + 1) * H], a.ndim - 1, H_pad))
    return jnp.concatenate(parts, axis=-1)


# ----------------------------------------------------------------------------
# Pallas kernel: one bidirectional GRU layer, full sequence.
# grid = (2 directions ["parallel"], nC time chunks ["arbitrary"]).
# ----------------------------------------------------------------------------
def _bigru_layer_kernel(x_ref, wih_ref, whh_ref, bfused_ref, bhn_ref,
                        out_ref, hT_ref, h_scr, gi_scr, *,
                        hidden_pad, chunk, n_chunks, seq_len):
    Hp = hidden_pad
    Tc = chunk
    nC = n_chunks
    d = pl.program_id(0)                   # direction: 0 = forward, 1 = reverse
    c = pl.program_id(1)                   # grid-order chunk index
    c_sel = c + d * (nC - 1 - 2 * c)       # chunk resident in x_ref / out_ref

    @pl.when(c == 0)
    def _():
        h_scr[...] = jnp.zeros_like(h_scr)

    # ---- hoisted input projection: one big matmul per chunk -----------------
    # fused bias = b_ih (all gates) + b_hh (r, z gates only).
    x = x_ref[...]                                         # (Tc, B, D_in)
    B = x.shape[1]
    gi = jnp.dot(x.reshape(Tc * B, x.shape[2]), wih_ref[0],
                 preferred_element_type=jnp.float32) + bfused_ref[0]
    gi_scr[...] = gi.reshape(Tc, B, 3 * Hp)

    w_hh = whh_ref[0]                                      # (Hp, 3Hp)
    b_hn = bhn_ref[0]                                      # (1, Hp)
    mask_tail = (nC * Tc != seq_len)                       # only if T was padded

    # ---- sequential recurrence over the chunk (Python-unrolled, Tc small) ---
    h = h_scr[...]                                         # (B, Hp)
    for i in range(Tc):
        tt = i + d * (Tc - 1 - 2 * i)                      # local time in chunk
        gi_t = gi_scr[tt]                                  # (B, 3Hp)
        gh = jnp.dot(h, w_hh, preferred_element_type=jnp.float32)
        r = jax.nn.sigmoid(gi_t[:, 0 * Hp:1 * Hp] + gh[:, 0 * Hp:1 * Hp])
        z = jax.nn.sigmoid(gi_t[:, 1 * Hp:2 * Hp] + gh[:, 1 * Hp:2 * Hp])
        n = jnp.tanh(gi_t[:, 2 * Hp:3 * Hp] + r * (gh[:, 2 * Hp:3 * Hp] + b_hn))
        h_new = (1.0 - z) * n + z * h
        if mask_tail:
            h_new = jnp.where(c_sel * Tc + tt < seq_len, h_new, h)
        out_ref[tt] = h_new.astype(out_ref.dtype)
        h = h_new
    h_scr[...] = h

    @pl.when(c == nC - 1)                                  # store final state once
    def _():
        hT_ref[0] = h.astype(hT_ref.dtype)


def _bigru_layer(x, wih_s, whh_s, bf_s, bhn_s, *, H_pad, Tc, nC, seq_len):
    """x: (T_pad, B_pad, D_in_pad) -> (out: (T_pad, B_pad, 2*H_pad), hT: (2, B_pad, H_pad))."""
    T_pad, B_pad, D_in_pad = x.shape
    kernel = functools.partial(_bigru_layer_kernel, hidden_pad=H_pad, chunk=Tc,
                               n_chunks=nC, seq_len=seq_len)
    out, hT = pl.pallas_call(
        kernel,
        out_shape=(jax.ShapeDtypeStruct((T_pad, B_pad, 2 * H_pad), jnp.float32),
                   jax.ShapeDtypeStruct((2, B_pad, H_pad), jnp.float32)),
        grid_spec=pltpu.PrefetchScalarGridSpec(
            num_scalar_prefetch=0,
            grid=(2, nC),
            in_specs=[
                pl.BlockSpec((Tc, B_pad, D_in_pad),
                             lambda d, c: (c + d * (nC - 1 - 2 * c), 0, 0)),
                pl.BlockSpec((1, D_in_pad, 3 * H_pad), lambda d, c: (d, 0, 0)),
                pl.BlockSpec((1, H_pad, 3 * H_pad), lambda d, c: (d, 0, 0)),
                pl.BlockSpec((1, 1, 3 * H_pad), lambda d, c: (d, 0, 0)),
                pl.BlockSpec((1, 1, H_pad), lambda d, c: (d, 0, 0)),
            ],
            out_specs=[
                # forward writes lane-dense half [0:H_pad], reverse [H_pad:2H_pad]
                pl.BlockSpec((Tc, B_pad, H_pad),
                             lambda d, c: (c + d * (nC - 1 - 2 * c), 0, d)),
                pl.BlockSpec((1, B_pad, H_pad), lambda d, c: (d, 0, 0)),
            ],
            scratch_shapes=[
                pltpu.VMEM((B_pad, H_pad), jnp.float32),           # carried h
                pltpu.VMEM((Tc, B_pad, 3 * H_pad), jnp.float32),   # precomputed gi
            ],
        ),
        compiler_params=pltpu.CompilerParams(
            dimension_semantics=("parallel", "arbitrary")),
    )(x, wih_s, whh_s, bf_s, bhn_s)
    return out, hT


# ----------------------------------------------------------------------------
# Parameter init (deterministic, PyTorch-like: GRU uniform(-1/sqrt(H), 1/sqrt(H)),
# embedding ~ N(0, 1)).  Logical (unpadded) shapes.
# ----------------------------------------------------------------------------
def init_encoder_params(key, src_vocab_size, embedding_dim, hidden_dim, num_layers):
    params = {}
    key, k_emb = jax.random.split(key)
    params["embedding"] = jax.random.normal(
        k_emb, (src_vocab_size, embedding_dim), jnp.float32)

    bound = 1.0 / float(hidden_dim) ** 0.5
    layers = []
    for layer in range(num_layers):
        d_in = embedding_dim if layer == 0 else 2 * hidden_dim
        dirs = []
        for _ in range(2):  # forward, reverse
            key, k1, k2, k3, k4 = jax.random.split(key, 5)
            w_ih = jax.random.uniform(k1, (d_in, 3 * hidden_dim), jnp.float32,
                                      -bound, bound)
            w_hh = jax.random.uniform(k2, (hidden_dim, 3 * hidden_dim), jnp.float32,
                                      -bound, bound)
            b_ih = jax.random.uniform(k3, (3 * hidden_dim,), jnp.float32, -bound, bound)
            b_hh = jax.random.uniform(k4, (3 * hidden_dim,), jnp.float32, -bound, bound)
            dirs.append((w_ih, w_hh, b_ih, b_hh))
        layers.append(dirs)
    params["gru"] = layers
    return params


def _prep_layer_weights(dir_params, H, H_pad, D_in_pad, first_layer):
    """Pad & stack one layer's per-direction weights into the kernel layout."""
    wih_l, whh_l, bf_l, bhn_l = [], [], [], []
    for (w_ih, w_hh, b_ih, b_hh) in dir_params:
        if first_layer:
            w_ih_rows = _pad_axis(w_ih, 0, D_in_pad)
        else:
            # input rows are [fwd hidden | rev hidden]; the layer input places
            # those at columns [0:H] and [H_pad:H_pad+H] of a 2*H_pad activation.
            w_ih_rows = jnp.concatenate(
                [_pad_axis(w_ih[:H], 0, H_pad), _pad_axis(w_ih[H:], 0, H_pad)],
                axis=0)
        wih_l.append(_pad_gates_last(w_ih_rows, H, H_pad))
        whh_l.append(_pad_gates_last(_pad_axis(w_hh, 0, H_pad), H, H_pad))
        b_fused = b_ih + jnp.concatenate([b_hh[:2 * H], jnp.zeros((H,), b_hh.dtype)])
        bf_l.append(_pad_gates_last(b_fused, H, H_pad).reshape(1, 3 * H_pad))
        bhn_l.append(_pad_axis(b_hh[2 * H:], 0, H_pad).reshape(1, H_pad))
    return (jnp.stack(wih_l), jnp.stack(whh_l), jnp.stack(bf_l), jnp.stack(bhn_l))


# ----------------------------------------------------------------------------
# Encoder forward (mirrors the PyTorch module's forward, eval mode).
# ----------------------------------------------------------------------------
def encoder_forward(src, params, hidden_dim, num_layers, chunk_target=32):
    T, B = src.shape
    H = hidden_dim
    H_pad = _round_up(H, 128)
    B_pad = _round_up(max(B, 1), 8)
    Tc = max(1, min(chunk_target, T))
    nC = pl.cdiv(T, Tc)
    T_pad = nC * Tc

    emb = params["embedding"]
    E = emb.shape[1]
    E_pad = _round_up(E, 128)
    # Embedding lookup on the lane-padded table (gather glue outside the kernel).
    x = _pad_axis(emb, 1, E_pad)[src]                       # (T, B, E_pad)
    x = jnp.pad(x, ((0, T_pad - T), (0, B_pad - B), (0, 0)))
    # TODO(synk): nn.Dropout on embeddings omitted (identity in eval mode).

    # TODO(synk): weights are kept f32 for exactness vs the reference; cast the
    # matmul operands to bf16 on v6e/v7x for ~2x MXU throughput if tolerable.
    hiddens = []
    for layer in range(num_layers):
        first = (layer == 0)
        D_in_pad = E_pad if first else 2 * H_pad
        wih_s, whh_s, bf_s, bhn_s = _prep_layer_weights(
            params["gru"][layer], H, H_pad, D_in_pad, first)
        x, hT = _bigru_layer(x, wih_s, whh_s, bf_s, bhn_s,
                             H_pad=H_pad, Tc=Tc, nC=nC, seq_len=T)
        hiddens.append(hT[0, :B, :H])
        hiddens.append(hT[1, :B, :H])
        # TODO(synk): inter-layer GRU dropout omitted (identity in eval mode).

    # TODO(synk): the fwd+rev sum could be fused into the last layer's epilogue;
    # kept as one elementwise JAX pass here.
    outputs = x[:T, :B, :H] + x[:T, :B, H_pad:H_pad + H]    # (T, B, H)
    hidden = jnp.stack(hiddens, axis=0)                      # (num_layers*2, B, H)
    return outputs, hidden


# ----------------------------------------------------------------------------
# Pure-JAX reference (lax.scan GRU) for correctness validation.
# ----------------------------------------------------------------------------
def _gru_ref_direction(x, w_ih, w_hh, b_ih, b_hh, H, reverse):
    T, B, _ = x.shape
    xs = x[::-1] if reverse else x

    def step(h, xt):
        gi = xt @ w_ih + b_ih
        gh = h @ w_hh + b_hh
        r = jax.nn.sigmoid(gi[:, :H] + gh[:, :H])
        z = jax.nn.sigmoid(gi[:, H:2 * H] + gh[:, H:2 * H])
        n = jnp.tanh(gi[:, 2 * H:] + r * gh[:, 2 * H:])
        h_new = (1.0 - z) * n + z * h
        return h_new, h_new

    h0 = jnp.zeros((B, H), jnp.float32)
    hT, ys = jax.lax.scan(step, h0, xs)
    if reverse:
        ys = ys[::-1]
    return ys, hT


def encoder_reference(src, params, hidden_dim, num_layers):
    x = params["embedding"][src]
    hiddens = []
    for layer in range(num_layers):
        outs = []
        for d in range(2):
            w_ih, w_hh, b_ih, b_hh = params["gru"][layer][d]
            out, hT = _gru_ref_direction(x, w_ih, w_hh, b_ih, b_hh,
                                         hidden_dim, reverse=(d == 1))
            outs.append(out)
            hiddens.append(hT)
        x = jnp.concatenate(outs, axis=-1)
    outputs = x[:, :, :hidden_dim] + x[:, :, hidden_dim:]
    hidden = jnp.stack(hiddens, axis=0)
    return outputs, hidden


if __name__ == "__main__":
    src_vocab_size = 32
    embedding_dim = 16
    hidden_dim = 32
    num_layers = 2
    T, B = 8, 2

    params = init_encoder_params(jax.random.PRNGKey(0), src_vocab_size,
                                 embedding_dim, hidden_dim, num_layers)
    src = jax.random.randint(jax.random.PRNGKey(1), (T, B), 0, src_vocab_size,
                             dtype=jnp.int32)

    outputs, hidden = encoder_forward(src, params, hidden_dim, num_layers)
    jax.block_until_ready((outputs, hidden))

    assert outputs.shape == (T, B, hidden_dim)
    assert hidden.shape == (num_layers * 2, B, hidden_dim)

    ref_out, ref_hid = encoder_reference(src, params, hidden_dim, num_layers)
    assert jnp.allclose(outputs, ref_out, atol=1e-4), "outputs mismatch vs reference"
    assert jnp.allclose(hidden, ref_hid, atol=1e-4), "hidden mismatch vs reference"

    print("KERNEL_OK")
</pallas_src>

<mosaic_0001>
module attributes {stable_mosaic.version = 11 : i64} {
  func.func @_bigru_layer_kernel(%arg0: i32, %arg1: i32, %arg2: memref<8x8x128xf32, #tpu.memory_space<vmem>>, %arg3: memref<1x128x384xf32, #tpu.memory_space<vmem>>, %arg4: memref<1x128x384xf32, #tpu.memory_space<vmem>>, %arg5: memref<1x1x384xf32, #tpu.memory_space<vmem>>, %arg6: memref<1x1x128xf32, #tpu.memory_space<vmem>>, %arg7: memref<8x8x128xf32, #tpu.memory_space<vmem>>, %arg8: memref<1x8x128xf32, #tpu.memory_space<vmem>>, %arg9: memref<8x128xf32, #tpu.memory_space<vmem>>, %arg10: memref<8x8x384xf32, #tpu.memory_space<vmem>>) attributes {dimension_semantics = [#tpu.dimension_semantics<parallel>, #tpu.dimension_semantics<arbitrary>], iteration_bounds = array<i64: 2, 1>, scalar_prefetch = 0 : i64, scratch_operands = 2 : i64, tpu.core_type = #tpu.core_type<tc>, window_params = [{transform_indices = @transform_0, window_bounds = array<i64: 8, 8, 128>}, {transform_indices = @transform_1, window_bounds = array<i64: 1, 128, 384>}, {transform_indices = @transform_2, window_bounds = array<i64: 1, 128, 384>}, {transform_indices = @transform_3, window_bounds = array<i64: 1, 1, 384>}, {transform_indices = @transform_4, window_bounds = array<i64: 1, 1, 128>}, {transform_indices = @transform_5, window_bounds = array<i64: 8, 8, 128>}, {transform_indices = @transform_6, window_bounds = array<i64: 1, 8, 128>}]} {
    %c0_i32 = arith.constant 0 : i32
    %0 = arith.cmpi eq, %arg1, %c0_i32 : i32
    %1 = arith.extui %0 : i1 to i32
    %c0_i32_0 = arith.constant 0 : i32
    %2 = arith.cmpi ne, %1, %c0_i32_0 : i32
    scf.if %2 {
      %cst_93 = arith.constant 0.000000e+00 : f32
      %327 = vector.broadcast %cst_93 : f32 to vector<8x128xf32>
      %c0_94 = arith.constant 0 : index
      %c0_95 = arith.constant 0 : index
      %328 = vector.load %arg9[%c0_94, %c0_95] : memref<8x128xf32, #tpu.memory_space<vmem>>, vector<8x128xf32>
      tpu.vector_store %arg9[%c0_94, %c0_95], %327 {strides = array<i32>} : memref<8x128xf32, #tpu.memory_space<vmem>>, vector<8x128xf32>,
    } else {
    }
    %c0 = arith.constant 0 : index
    %c0_1 = arith.constant 0 : index
    %c0_2 = arith.constant 0 : index
    %3 = vector.load %arg2[%c0, %c0_1, %c0_2] : memref<8x8x128xf32, #tpu.memory_space<vmem>>, vector<8x8x128xf32>
    %4 = vector.shape_cast %3 : vector<8x8x128xf32> to vector<64x128xf32>
    %c0_3 = arith.constant 0 : index
    %c0_4 = arith.constant 0 : index
    %c0_5 = arith.constant 0 : index
    %5 = vector.load %arg3[%c0_3, %c0_4, %c0_5] : memref<1x128x384xf32, #tpu.memory_space<vmem>>, vector<1x128x384xf32>
    %6 = vector.shape_cast %5 : vector<1x128x384xf32> to vector<128x384xf32>
    %cst = arith.constant dense<0.000000e+00> : vector<64x384xf32>
    %7 = tpu.matmul %4, %6, %cst {dimension_numbers = #tpu.dot_dimension_numbers<[1], [0], [0], [1], [0, 0, 1, 1], [], []>} : vector<64x128xf32>, vector<128x384xf32>, vector<64x384xf32> -> vector<64x384xf32>
    %c0_6 = arith.constant 0 : index
    %c0_7 = arith.constant 0 : index
    %c0_8 = arith.constant 0 : index
    %8 = vector.load %arg5[%c0_6, %c0_7, %c0_8] : memref<1x1x384xf32, #tpu.memory_space<vmem>>, vector<1x1x384xf32>
    %9 = vector.shape_cast %8 : vector<1x1x384xf32> to vector<1x384xf32>
    %10 = vector.broadcast %9 : vector<1x384xf32> to vector<64x384xf32>
    %11 = arith.addf %7, %10 : vector<64x384xf32>
    %12 = vector.shape_cast %11 : vector<64x384xf32> to vector<8x8x384xf32>
    %c0_9 = arith.constant 0 : index
    %c0_10 = arith.constant 0 : index
    %c0_11 = arith.constant 0 : index
    %13 = vector.load %arg10[%c0_9, %c0_10, %c0_11] : memref<8x8x384xf32, #tpu.memory_space<vmem>>, vector<8x8x384xf32>
    tpu.vector_store %arg10[%c0_9, %c0_10, %c0_11], %12 {strides = array<i32>} : memref<8x8x384xf32, #tpu.memory_space<vmem>>, vector<8x8x384xf32>,
    %c0_12 = arith.constant 0 : index
    %c0_13 = arith.constant 0 : index
    %c0_14 = arith.constant 0 : index
    %14 = vector.load %arg4[%c0_12, %c0_13, %c0_14] : memref<1x128x384xf32, #tpu.memory_space<vmem>>, vector<1x128x384xf32>
    %15 = vector.shape_cast %14 : vector<1x128x384xf32> to vector<128x384xf32>
    %c0_15 = arith.constant 0 : index
    %c0_16 = arith.constant 0 : index
    %c0_17 = arith.constant 0 : index
    %16 = vector.load %arg6[%c0_15, %c0_16, %c0_17] : memref<1x1x128xf32, #tpu.memory_space<vmem>>, vector<1x1x128xf32>
    %17 = vector.shape_cast %16 : vector<1x1x128xf32> to vector<1x128xf32>
    %c0_18 = arith.constant 0 : index
    %c0_19 = arith.constant 0 : index
    %18 = vector.load %arg9[%c0_18, %c0_19] : memref<8x128xf32, #tpu.memory_space<vmem>>, vector<8x128xf32>
    %c7_i32 = arith.constant 7 : i32
    %19 = arith.muli %arg0, %c7_i32 : i32
    %c0_i32_20 = arith.constant 0 : i32
    %20 = arith.addi %c0_i32_20, %19 : i32
    %21 = arith.index_cast %20 : i32 to index
    %c0_21 = arith.constant 0 : index
    %c0_22 = arith.constant 0 : index
    %22 = vector.load %arg10[%21, %c0_21, %c0_22] : memref<8x8x384xf32, #tpu.memory_space<vmem>>, vector<1x8x384xf32>
    %23 = vector.shape_cast %22 : vector<1x8x384xf32> to vector<8x384xf32>
    %cst_23 = arith.constant dense<0.000000e+00> : vector<8x384xf32>
    %24 = tpu.matmul %18, %15, %cst_23 {dimension_numbers = #tpu.dot_dimension_numbers<[1], [0], [0], [1], [0, 0, 1, 1], [], []>} : vector<8x128xf32>, vector<128x384xf32>, vector<8x384xf32> -> vector<8x384xf32>
    %25 = vector.extract_strided_slice %23 {offsets = [0, 0], sizes = [8, 128], strides = [1, 1]} : vector<8x384xf32> to vector<8x128xf32>
    %26 = vector.extract_strided_slice %24 {offsets = [0, 0], sizes = [8, 128], strides = [1, 1]} : vector<8x384xf32> to vector<8x128xf32>
    %27 = arith.addf %25, %26 : vector<8x128xf32>
    %28 = arith.negf %27 : vector<8x128xf32>
    %29 = math.exp %28 : vector<8x128xf32>
    %cst_24 = arith.constant 1.000000e+00 : f32
    %30 = vector.broadcast %cst_24 : f32 to vector<8x128xf32>
    %31 = arith.addf %30, %29 : vector<8x128xf32>
    %32 = arith.divf %30, %31 : vector<8x128xf32>
    %33 = vector.extract_strided_slice %23 {offsets = [0, 128], sizes = [8, 128], strides = [1, 1]} : vector<8x384xf32> to vector<8x128xf32>
    %34 = vector.extract_strided_slice %24 {offsets = [0, 128], sizes = [8, 128], strides = [1, 1]} : vector<8x384xf32> to vector<8x128xf32>
    %35 = arith.addf %33, %34 : vector<8x128xf32>
    %36 = arith.negf %35 : vector<8x128xf32>
    %37 = math.exp %36 : vector<8x128xf32>
    %cst_25 = arith.constant 1.000000e+00 : f32
    %38 = vector.broadcast %cst_25 : f32 to vector<8x128xf32>
    %39 = arith.addf %38, %37 : vector<8x128xf32>
    %40 = arith.divf %38, %39 : vector<8x128xf32>
    %41 = vector.extract_strided_slice %23 {offsets = [0, 256], sizes = [8, 128], strides = [1, 1]} : vector<8x384xf32> to vector<8x128xf32>
    %42 = vector.extract_strided_slice %24 {offsets = [0, 256], sizes = [8, 128], strides = [1, 1]} : vector<8x384xf32> to vector<8x128xf32>
    %43 = vector.broadcast %17 : vector<1x128xf32> to vector<8x128xf32>
    %44 = arith.addf %42, %43 : vector<8x128xf32>
    %45 = arith.mulf %32, %44 : vector<8x128xf32>
    %46 = arith.addf %41, %45 : vector<8x128xf32>
    %47 = math.tanh %46 : vector<8x128xf32>
    %cst_26 = arith.constant 1.000000e+00 : f32
    %48 = vector.broadcast %cst_26 : f32 to vector<8x128xf32>
    %49 = arith.subf %48, %40 : vector<8x128xf32>
    %50 = arith.mulf %49, %47 : vector<8x128xf32>
    %51 = arith.mulf %40, %18 : vector<8x128xf32>
    %52 = arith.addf %50, %51 : vector<8x128xf32>
    %53 = arith.index_cast %20 : i32 to index
    %c0_27 = arith.constant 0 : index
    %c0_28 = arith.constant 0 : index
    %54 = vector.load %arg7[%53, %c0_27, %c0_28] : memref<8x8x128xf32, #tpu.memory_space<vmem>>, vector<1x8x128xf32>
    %55 = vector.shape_cast %54 : vector<1x8x128xf32> to vector<8x128xf32>
    %56 = vector.shape_cast %52 : vector<8x128xf32> to vector<1x8x128xf32>
    tpu.vector_store %arg7[%53, %c0_27, %c0_28], %56 {strides = array<i32>} : memref<8x8x128xf32, #tpu.memory_space<vmem>>, vector<1x8x128xf32>,
    %c5_i32 = arith.constant 5 : i32
    %57 = arith.muli %arg0, %c5_i32 : i32
    %c1_i32 = arith.constant 1 : i32
    %58 = arith.addi %c1_i32, %57 : i32
    %59 = arith.index_cast %58 : i32 to index
    %c0_29 = arith.constant 0 : index
    %c0_30 = arith.constant 0 : index
    %60 = vector.load %arg10[%59, %c0_29, %c0_30] : memref<8x8x384xf32, #tpu.memory_space<vmem>>, vector<1x8x384xf32>
    %61 = vector.shape_cast %60 : vector<1x8x384xf32> to vector<8x384xf32>
    %cst_31 = arith.constant dense<0.000000e+00> : vector<8x384xf32>
    %62 = tpu.matmul %52, %15, %cst_31 {dimension_numbers = #tpu.dot_dimension_numbers<[1], [0], [0], [1], [0, 0, 1, 1], [], []>} : vector<8x128xf32>, vector<128x384xf32>, vector<8x384xf32> -> vector<8x384xf32>
    %63 = vector.extract_strided_slice %61 {offsets = [0, 0], sizes = [8, 128], strides = [1, 1]} : vector<8x384xf32> to vector<8x128xf32>
    %64 = vector.extract_strided_slice %62 {offsets = [0, 0], sizes = [8, 128], strides = [1, 1]} : vector<8x384xf32> to vector<8x128xf32>
    %65 = arith.addf %63, %64 : vector<8x128xf32>
    %66 = arith.negf %65 : vector<8x128xf32>
    %67 = math.exp %66 : vector<8x128xf32>
    %cst_32 = arith.constant 1.000000e+00 : f32
    %68 = vector.broadcast %cst_32 : f32 to vector<8x128xf32>
    %69 = arith.addf %68, %67 : vector<8x128xf32>
    %70 = arith.divf %68, %69 : vector<8x128xf32>
    %71 = vector.extract_strided_slice %61 {offsets = [0, 128], sizes = [8, 128], strides = [1, 1]} : vector<8x384xf32> to vector<8x128xf32>
    %72 = vector.extract_strided_slice %62 {offsets = [0, 128], sizes = [8, 128], strides = [1, 1]} : vector<8x384xf32> to vector<8x128xf32>
    %73 = arith.addf %71, %72 : vector<8x128xf32>
    %74 = arith.negf %73 : vector<8x128xf32>
    %75 = math.exp %74 : vector<8x128xf32>
    %cst_33 = arith.constant 1.000000e+00 : f32
    %76 = vector.broadcast %cst_33 : f32 to vector<8x128xf32>
    %77 = arith.addf %76, %75 : vector<8x128xf32>
    %78 = arith.divf %76, %77 : vector<8x128xf32>
    %79 = vector.extract_strided_slice %61 {offsets = [0, 256], sizes = [8, 128], strides = [1, 1]} : vector<8x384xf32> to vector<8x128xf32>
    %80 = vector.extract_strided_slice %62 {offsets = [0, 256], sizes = [8, 128], strides = [1, 1]} : vector<8x384xf32> to vector<8x128xf32>
    %81 = vector.broadcast %17 : vector<1x128xf32> to vector<8x128xf32>
    %82 = arith.addf %80, %81 : vector<8x128xf32>
    %83 = arith.mulf %70, %82 : vector<8x128xf32>
    %84 = arith.addf %79, %83 : vector<8x128xf32>
    %85 = math.tanh %84 : vector<8x128xf32>
    %cst_34 = arith.constant 1.000000e+00 : f32
    %86 = vector.broadcast %cst_34 : f32 to vector<8x128xf32>
    %87 = arith.subf %86, %78 : vector<8x128xf32>
    %88 = arith.mulf %87, %85 : vector<8x128xf32>
    %89 = arith.mulf %78, %52 : vector<8x128xf32>
    %90 = arith.addf %88, %89 : vector<8x128xf32>
    %91 = arith.index_cast %58 : i32 to index
    %c0_35 = arith.constant 0 : index
    %c0_36 = arith.constant 0 : index
    %92 = vector.load %arg7[%91, %c0_35, %c0_36] : memref<8x8x128xf32, #tpu.memory_space<vmem>>, vector<1x8x128xf32>
    %93 = vector.shape_cast %92 : vector<1x8x128xf32> to vector<8x128xf32>
    %94 = vector.shape_cast %90 : vector<8x128xf32> to vector<1x8x128xf32>
    tpu.vector_store %arg7[%91, %c0_35, %c0_36], %94 {strides = array<i32>} : memref<8x8x128xf32, #tpu.memory_space<vmem>>, vector<1x8x128xf32>,
    %c3_i32 = arith.constant 3 : i32
    %95 = arith.muli %arg0, %c3_i32 : i32
    %c2_i32 = arith.constant 2 : i32
    %96 = arith.addi %c2_i32, %95 : i32
    %97 = arith.index_cast %96 : i32 to index
    %c0_37 = arith.constant 0 : index
    %c0_38 = arith.constant 0 : index
    %98 = vector.load %arg10[%97, %c0_37, %c0_38] : memref<8x8x384xf32, #tpu.memory_space<vmem>>, vector<1x8x384xf32>
    %99 = vector.shape_cast %98 : vector<1x8x384xf32> to vector<8x384xf32>
    %cst_39 = arith.constant dense<0.000000e+00> : vector<8x384xf32>
    %100 = tpu.matmul %90, %15, %cst_39 {dimension_numbers = #tpu.dot_dimension_numbers<[1], [0], [0], [1], [0, 0, 1, 1], [], []>} : vector<8x128xf32>, vector<128x384xf32>, vector<8x384xf32> -> vector<8x384xf32>
    %101 = vector.extract_strided_slice %99 {offsets = [0, 0], sizes = [8, 128], strides = [1, 1]} : vector<8x384xf32> to vector<8x128xf32>
    %102 = vector.extract_strided_slice %100 {offsets = [0, 0], sizes = [8, 128], strides = [1, 1]} : vector<8x384xf32> to vector<8x128xf32>
    %103 = arith.addf %101, %102 : vector<8x128xf32>
    %104 = arith.negf %103 : vector<8x128xf32>
    %105 = math.exp %104 : vector<8x128xf32>
    %cst_40 = arith.constant 1.000000e+00 : f32
    %106 = vector.broadcast %cst_40 : f32 to vector<8x128xf32>
    %107 = arith.addf %106, %105 : vector<8x128xf32>
    %108 = arith.divf %106, %107 : vector<8x128xf32>
    %109 = vector.extract_strided_slice %99 {offsets = [0, 128], sizes = [8, 128], strides = [1, 1]} : vector<8x384xf32> to vector<8x128xf32>
    %110 = vector.extract_strided_slice %100 {offsets = [0, 128], sizes = [8, 128], strides = [1, 1]} : vector<8x384xf32> to vector<8x128xf32>
    %111 = arith.addf %109, %110 : vector<8x128xf32>
    %112 = arith.negf %111 : vector<8x128xf32>
    %113 = math.exp %112 : vector<8x128xf32>
    %cst_41 = arith.constant 1.000000e+00 : f32
    %114 = vector.broadcast %cst_41 : f32 to vector<8x128xf32>
    %115 = arith.addf %114, %113 : vector<8x128xf32>
    %116 = arith.divf %114, %115 : vector<8x128xf32>
    %117 = vector.extract_strided_slice %99 {offsets = [0, 256], sizes = [8, 128], strides = [1, 1]} : vector<8x384xf32> to vector<8x128xf32>
    %118 = vector.extract_strided_slice %100 {offsets = [0, 256], sizes = [8, 128], strides = [1, 1]} : vector<8x384xf32> to vector<8x128xf32>
    %119 = vector.broadcast %17 : vector<1x128xf32> to vector<8x128xf32>
    %120 = arith.addf %118, %119 : vector<8x128xf32>
    %121 = arith.mulf %108, %120 : vector<8x128xf32>
    %122 = arith.addf %117, %121 : vector<8x128xf32>
    %123 = math.tanh %122 : vector<8x128xf32>
    %cst_42 = arith.constant 1.000000e+00 : f32
    %124 = vector.broadcast %cst_42 : f32 to vector<8x128xf32>
    %125 = arith.subf %124, %116 : vector<8x128xf32>
    %126 = arith.mulf %125, %123 : vector<8x128xf32>
    %127 = arith.mulf %116, %90 : vector<8x128xf32>
    %128 = arith.addf %126, %127 : vector<8x128xf32>
    %129 = arith.index_cast %96 : i32 to index
    %c0_43 = arith.constant 0 : index
    %c0_44 = arith.constant 0 : index
    %130 = vector.load %arg7[%129, %c0_43, %c0_44] : memref<8x8x128xf32, #tpu.memory_space<vmem>>, vector<1x8x128xf32>
    %131 = vector.shape_cast %130 : vector<1x8x128xf32> to vector<8x128xf32>
    %132 = vector.shape_cast %128 : vector<8x128xf32> to vector<1x8x128xf32>
    tpu.vector_store %arg7[%129, %c0_43, %c0_44], %132 {strides = array<i32>} : memref<8x8x128xf32, #tpu.memory_space<vmem>>, vector<1x8x128xf32>,
    %c1_i32_45 = arith.constant 1 : i32
    %133 = arith.muli %arg0, %c1_i32_45 : i32
    %c3_i32_46 = arith.constant 3 : i32
    %134 = arith.addi %c3_i32_46, %133 : i32
    %135 = arith.index_cast %134 : i32 to index
    %c0_47 = arith.constant 0 : index
    %c0_48 = arith.constant 0 : index
    %136 = vector.load %arg10[%135, %c0_47, %c0_48] : memref<8x8x384xf32, #tpu.memory_space<vmem>>, vector<1x8x384xf32>
    %137 = vector.shape_cast %136 : vector<1x8x384xf32> to vector<8x384xf32>
    %cst_49 = arith.constant dense<0.000000e+00> : vector<8x384xf32>
    %138 = tpu.matmul %128, %15, %cst_49 {dimension_numbers = #tpu.dot_dimension_numbers<[1], [0], [0], [1], [0, 0, 1, 1], [], []>} : vector<8x128xf32>, vector<128x384xf32>, vector<8x384xf32> -> vector<8x384xf32>
    %139 = vector.extract_strided_slice %137 {offsets = [0, 0], sizes = [8, 128], strides = [1, 1]} : vector<8x384xf32> to vector<8x128xf32>
    %140 = vector.extract_strided_slice %138 {offsets = [0, 0], sizes = [8, 128], strides = [1, 1]} : vector<8x384xf32> to vector<8x128xf32>
    %141 = arith.addf %139, %140 : vector<8x128xf32>
    %142 = arith.negf %141 : vector<8x128xf32>
    %143 = math.exp %142 : vector<8x128xf32>
    %cst_50 = arith.constant 1.000000e+00 : f32
    %144 = vector.broadcast %cst_50 : f32 to vector<8x128xf32>
    %145 = arith.addf %144, %143 : vector<8x128xf32>
    %146 = arith.divf %144, %145 : vector<8x128xf32>
    %147 = vector.extract_strided_slice %137 {offsets = [0, 128], sizes = [8, 128], strides = [1, 1]} : vector<8x384xf32> to vector<8x128xf32>
    %148 = vector.extract_strided_slice %138 {offsets = [0, 128], sizes = [8, 128], strides = [1, 1]} : vector<8x384xf32> to vector<8x128xf32>
    %149 = arith.addf %147, %148 : vector<8x128xf32>
    %150 = arith.negf %149 : vector<8x128xf32>
    %151 = math.exp %150 : vector<8x128xf32>
    %cst_51 = arith.constant 1.000000e+00 : f32
    %152 = vector.broadcast %cst_51 : f32 to vector<8x128xf32>
    %153 = arith.addf %152, %151 : vector<8x128xf32>
    %154 = arith.divf %152, %153 : vector<8x128xf32>
    %155 = vector.extract_strided_slice %137 {offsets = [0, 256], sizes = [8, 128], strides = [1, 1]} : vector<8x384xf32> to vector<8x128xf32>
    %156 = vector.extract_strided_slice %138 {offsets = [0, 256], sizes = [8, 128], strides = [1, 1]} : vector<8x384xf32> to vector<8x128xf32>
    %157 = vector.broadcast %17 : vector<1x128xf32> to vector<8x128xf32>
    %158 = arith.addf %156, %157 : vector<8x128xf32>
    %159 = arith.mulf %146, %158 : vector<8x128xf32>
    %160 = arith.addf %155, %159 : vector<8x128xf32>
    %161 = math.tanh %160 : vector<8x128xf32>
    %cst_52 = arith.constant 1.000000e+00 : f32
    %162 = vector.broadcast %cst_52 : f32 to vector<8x128xf32>
    %163 = arith.subf %162, %154 : vector<8x128xf32>
    %164 = arith.mulf %163, %161 : vector<8x128xf32>
    %165 = arith.mulf %154, %128 : vector<8x128xf32>
    %166 = arith.addf %164, %165 : vector<8x128xf32>
    %167 = arith.index_cast %134 : i32 to index
    %c0_53 = arith.constant 0 : index
    %c0_54 = arith.constant 0 : index
    %168 = vector.load %arg7[%167, %c0_53, %c0_54] : memref<8x8x128xf32, #tpu.memory_space<vmem>>, vector<1x8x128xf32>
    %169 = vector.shape_cast %168 : vector<1x8x128xf32> to vector<8x128xf32>
    %170 = vector.shape_cast %166 : vector<8x128xf32> to vector<1x8x128xf32>
    tpu.vector_store %arg7[%167, %c0_53, %c0_54], %170 {strides = array<i32>} : memref<8x8x128xf32, #tpu.memory_space<vmem>>, vector<1x8x128xf32>,
    %c-1_i32 = arith.constant -1 : i32
    %171 = arith.muli %arg0, %c-1_i32 : i32
    %c4_i32 = arith.constant 4 : i32
    %172 = arith.addi %c4_i32, %171 : i32
    %173 = arith.index_cast %172 : i32 to index
    %c0_55 = arith.constant 0 : index
    %c0_56 = arith.constant 0 : index
    %174 = vector.load %arg10[%173, %c0_55, %c0_56] : memref<8x8x384xf32, #tpu.memory_space<vmem>>, vector<1x8x384xf32>
    %175 = vector.shape_cast %174 : vector<1x8x384xf32> to vector<8x384xf32>
    %cst_57 = arith.constant dense<0.000000e+00> : vector<8x384xf32>
    %176 = tpu.matmul %166, %15, %cst_57 {dimension_numbers = #tpu.dot_dimension_numbers<[1], [0], [0], [1], [0, 0, 1, 1], [], []>} : vector<8x128xf32>, vector<128x384xf32>, vector<8x384xf32> -> vector<8x384xf32>
    %177 = vector.extract_strided_slice %175 {offsets = [0, 0], sizes = [8, 128], strides = [1, 1]} : vector<8x384xf32> to vector<8x128xf32>
    %178 = vector.extract_strided_slice %176 {offsets = [0, 0], sizes = [8, 128], strides = [1, 1]} : vector<8x384xf32> to vector<8x128xf32>
    %179 = arith.addf %177, %178 : vector<8x128xf32>
    %180 = arith.negf %179 : vector<8x128xf32>
    %181 = math.exp %180 : vector<8x128xf32>
    %cst_58 = arith.constant 1.000000e+00 : f32
    %182 = vector.broadcast %cst_58 : f32 to vector<8x128xf32>
    %183 = arith.addf %182, %181 : vector<8x128xf32>
    %184 = arith.divf %182, %183 : vector<8x128xf32>
    %185 = vector.extract_strided_slice %175 {offsets = [0, 128], sizes = [8, 128], strides = [1, 1]} : vector<8x384xf32> to vector<8x128xf32>
    %186 = vector.extract_strided_slice %176 {offsets = [0, 128], sizes = [8, 128], strides = [1, 1]} : vector<8x384xf32> to vector<8x128xf32>
    %187 = arith.addf %185, %186 : vector<8x128xf32>
    %188 = arith.negf %187 : vector<8x128xf32>
    %189 = math.exp %188 : vector<8x128xf32>
    %cst_59 = arith.constant 1.000000e+00 : f32
    %190 = vector.broadcast %cst_59 : f32 to vector<8x128xf32>
    %191 = arith.addf %190, %189 : vector<8x128xf32>
    %192 = arith.divf %190, %191 : vector<8x128xf32>
    %193 = vector.extract_strided_slice %175 {offsets = [0, 256], sizes = [8, 128], strides = [1, 1]} : vector<8x384xf32> to vector<8x128xf32>
    %194 = vector.extract_strided_slice %176 {offsets = [0, 256], sizes = [8, 128], strides = [1, 1]} : vector<8x384xf32> to vector<8x128xf32>
    %195 = vector.broadcast %17 : vector<1x128xf32> to vector<8x128xf32>
    %196 = arith.addf %194, %195 : vector<8x128xf32>
    %197 = arith.mulf %184, %196 : vector<8x128xf32>
    %198 = arith.addf %193, %197 : vector<8x128xf32>
    %199 = math.tanh %198 : vector<8x128xf32>
    %cst_60 = arith.constant 1.000000e+00 : f32
    %200 = vector.broadcast %cst_60 : f32 to vector<8x128xf32>
    %201 = arith.subf %200, %192 : vector<8x128xf32>
    %202 = arith.mulf %201, %199 : vector<8x128xf32>
    %203 = arith.mulf %192, %166 : vector<8x128xf32>
    %204 = arith.addf %202, %203 : vector<8x128xf32>
    %205 = arith.index_cast %172 : i32 to index
    %c0_61 = arith.constant 0 : index
    %c0_62 = arith.constant 0 : index
    %206 = vector.load %arg7[%205, %c0_61, %c0_62] : memref<8x8x128xf32, #tpu.memory_space<vmem>>, vector<1x8x128xf32>
    %207 = vector.shape_cast %206 : vector<1x8x128xf32> to vector<8x128xf32>
    %208 = vector.shape_cast %204 : vector<8x128xf32> to vector<1x8x128xf32>
    tpu.vector_store %arg7[%205, %c0_61, %c0_62], %208 {strides = array<i32>} : memref<8x8x128xf32, #tpu.memory_space<vmem>>, vector<1x8x128xf32>,
    %c-3_i32 = arith.constant -3 : i32
    %209 = arith.muli %arg0, %c-3_i32 : i32
    %c5_i32_63 = arith.constant 5 : i32
    %210 = arith.addi %c5_i32_63, %209 : i32
    %211 = arith.index_cast %210 : i32 to index
    %c0_64 = arith.constant 0 : index
    %c0_65 = arith.constant 0 : index
    %212 = vector.load %arg10[%211, %c0_64, %c0_65] : memref<8x8x384xf32, #tpu.memory_space<vmem>>, vector<1x8x384xf32>
    %213 = vector.shape_cast %212 : vector<1x8x384xf32> to vector<8x384xf32>
    %cst_66 = arith.constant dense<0.000000e+00> : vector<8x384xf32>
    %214 = tpu.matmul %204, %15, %cst_66 {dimension_numbers = #tpu.dot_dimension_numbers<[1], [0], [0], [1], [0, 0, 1, 1], [], []>} : vector<8x128xf32>, vector<128x384xf32>, vector<8x384xf32> -> vector<8x384xf32>
    %215 = vector.extract_strided_slice %213 {offsets = [0, 0], sizes = [8, 128], strides = [1, 1]} : vector<8x384xf32> to vector<8x128xf32>
    %216 = vector.extract_strided_slice %214 {offsets = [0, 0], sizes = [8, 128], strides = [1, 1]} : vector<8x384xf32> to vector<8x128xf32>
    %217 = arith.addf %215, %216 : vector<8x128xf32>
    %218 = arith.negf %217 : vector<8x128xf32>
    %219 = math.exp %218 : vector<8x128xf32>
    %cst_67 = arith.constant 1.000000e+00 : f32
    %220 = vector.broadcast %cst_67 : f32 to vector<8x128xf32>
    %221 = arith.addf %220, %219 : vector<8x128xf32>
    %222 = arith.divf %220, %221 : vector<8x128xf32>
    %223 = vector.extract_strided_slice %213 {offsets = [0, 128], sizes = [8, 128], strides = [1, 1]} : vector<8x384xf32> to vector<8x128xf32>
    %224 = vector.extract_strided_slice %214 {offsets = [0, 128], sizes = [8, 128], strides = [1, 1]} : vector<8x384xf32> to vector<8x128xf32>
    %225 = arith.addf %223, %224 : vector<8x128xf32>
    %226 = arith.negf %225 : vector<8x128xf32>
    %227 = math.exp %226 : vector<8x128xf32>
    %cst_68 = arith.constant 1.000000e+00 : f32
    %228 = vector.broadcast %cst_68 : f32 to vector<8x128xf32>
    %229 = arith.addf %228, %227 : vector<8x128xf32>
    %230 = arith.divf %228, %229 : vector<8x128xf32>
    %231 = vector.extract_strided_slice %213 {offsets = [0, 256], sizes = [8, 128], strides = [1, 1]} : vector<8x384xf32> to vector<8x128xf32>
    %232 = vector.extract_strided_slice %214 {offsets = [0, 256], sizes = [8, 128], strides = [1, 1]} : vector<8x384xf32> to vector<8x128xf32>
    %233 = vector.broadcast %17 : vector<1x128xf32> to vector<8x128xf32>
    %234 = arith.addf %232, %233 : vector<8x128xf32>
    %235 = arith.mulf %222, %234 : vector<8x128xf32>
    %236 = arith.addf %231, %235 : vector<8x128xf32>
    %237 = math.tanh %236 : vector<8x128xf32>
    %cst_69 = arith.constant 1.000000e+00 : f32
    %238 = vector.broadcast %cst_69 : f32 to vector<8x128xf32>
    %239 = arith.subf %238, %230 : vector<8x128xf32>
    %240 = arith.mulf %239, %237 : vector<8x128xf32>
    %241 = arith.mulf %230, %204 : vector<8x128xf32>
    %242 = arith.addf %240, %241 : vector<8x128xf32>
    %243 = arith.index_cast %210 : i32 to index
    %c0_70 = arith.constant 0 : index
    %c0_71 = arith.constant 0 : index
    %244 = vector.load %arg7[%243, %c0_70, %c0_71] : memref<8x8x128xf32, #tpu.memory_space<vmem>>, vector<1x8x128xf32>
    %245 = vector.shape_cast %244 : vector<1x8x128xf32> to vector<8x128xf32>
    %246 = vector.shape_cast %242 : vector<8x128xf32> to vector<1x8x128xf32>
    tpu.vector_store %arg7[%243, %c0_70, %c0_71], %246 {strides = array<i32>} : memref<8x8x128xf32, #tpu.memory_space<vmem>>, vector<1x8x128xf32>,
    %c-5_i32 = arith.constant -5 : i32
    %247 = arith.muli %arg0, %c-5_i32 : i32
    %c6_i32 = arith.constant 6 : i32
    %248 = arith.addi %c6_i32, %247 : i32
    %249 = arith.index_cast %248 : i32 to index
    %c0_72 = arith.constant 0 : index
    %c0_73 = arith.constant 0 : index
    %250 = vector.load %arg10[%249, %c0_72, %c0_73] : memref<8x8x384xf32, #tpu.memory_space<vmem>>, vector<1x8x384xf32>
    %251 = vector.shape_cast %250 : vector<1x8x384xf32> to vector<8x384xf32>
    %cst_74 = arith.constant dense<0.000000e+00> : vector<8x384xf32>
    %252 = tpu.matmul %242, %15, %cst_74 {dimension_numbers = #tpu.dot_dimension_numbers<[1], [0], [0], [1], [0, 0, 1, 1], [], []>} : vector<8x128xf32>, vector<128x384xf32>, vector<8x384xf32> -> vector<8x384xf32>
    %253 = vector.extract_strided_slice %251 {offsets = [0, 0], sizes = [8, 128], strides = [1, 1]} : vector<8x384xf32> to vector<8x128xf32>
    %254 = vector.extract_strided_slice %252 {offsets = [0, 0], sizes = [8, 128], strides = [1, 1]} : vector<8x384xf32> to vector<8x128xf32>
    %255 = arith.addf %253, %254 : vector<8x128xf32>
    %256 = arith.negf %255 : vector<8x128xf32>
    %257 = math.exp %256 : vector<8x128xf32>
    %cst_75 = arith.constant 1.000000e+00 : f32
    %258 = vector.broadcast %cst_75 : f32 to vector<8x128xf32>
    %259 = arith.addf %258, %257 : vector<8x128xf32>
    %260 = arith.divf %258, %259 : vector<8x128xf32>
    %261 = vector.extract_strided_slice %251 {offsets = [0, 128], sizes = [8, 128], strides = [1, 1]} : vector<8x384xf32> to vector<8x128xf32>
    %262 = vector.extract_strided_slice %252 {offsets = [0, 128], sizes = [8, 128], strides = [1, 1]} : vector<8x384xf32> to vector<8x128xf32>
    %263 = arith.addf %261, %262 : vector<8x128xf32>
    %264 = arith.negf %263 : vector<8x128xf32>
    %265 = math.exp %264 : vector<8x128xf32>
    %cst_76 = arith.constant 1.000000e+00 : f32
    %266 = vector.broadcast %cst_76 : f32 to vector<8x128xf32>
    %267 = arith.addf %266, %265 : vector<8x128xf32>
    %268 = arith.divf %266, %267 : vector<8x128xf32>
    %269 = vector.extract_strided_slice %251 {offsets = [0, 256], sizes = [8, 128], strides = [1, 1]} : vector<8x384xf32> to vector<8x128xf32>
    %270 = vector.extract_strided_slice %252 {offsets = [0, 256], sizes = [8, 128], strides = [1, 1]} : vector<8x384xf32> to vector<8x128xf32>
    %271 = vector.broadcast %17 : vector<1x128xf32> to vector<8x128xf32>
    %272 = arith.addf %270, %271 : vector<8x128xf32>
    %273 = arith.mulf %260, %272 : vector<8x128xf32>
    %274 = arith.addf %269, %273 : vector<8x128xf32>
    %275 = math.tanh %274 : vector<8x128xf32>
    %cst_77 = arith.constant 1.000000e+00 : f32
    %276 = vector.broadcast %cst_77 : f32 to vector<8x128xf32>
    %277 = arith.subf %276, %268 : vector<8x128xf32>
    %278 = arith.mulf %277, %275 : vector<8x128xf32>
    %279 = arith.mulf %268, %242 : vector<8x128xf32>
    %280 = arith.addf %278, %279 : vector<8x128xf32>
    %281 = arith.index_cast %248 : i32 to index
    %c0_78 = arith.constant 0 : index
    %c0_79 = arith.constant 0 : index
    %282 = vector.load %arg7[%281, %c0_78, %c0_79] : memref<8x8x128xf32, #tpu.memory_space<vmem>>, vector<1x8x128xf32>
    %283 = vector.shape_cast %282 : vector<1x8x128xf32> to vector<8x128xf32>
    %284 = vector.shape_cast %280 : vector<8x128xf32> to vector<1x8x128xf32>
    tpu.vector_store %arg7[%281, %c0_78, %c0_79], %284 {strides = array<i32>} : memref<8x8x128xf32, #tpu.memory_space<vmem>>, vector<1x8x128xf32>,
    %c-7_i32 = arith.constant -7 : i32
    %285 = arith.muli %arg0, %c-7_i32 : i32
    %c7_i32_80 = arith.constant 7 : i32
    %286 = arith.addi %c7_i32_80, %285 : i32
    %287 = arith.index_cast %286 : i32 to index
    %c0_81 = arith.constant 0 : index
    %c0_82 = arith.constant 0 : index
    %288 = vector.load %arg10[%287, %c0_81, %c0_82] : memref<8x8x384xf32, #tpu.memory_space<vmem>>, vector<1x8x384xf32>
    %289 = vector.shape_cast %288 : vector<1x8x384xf32> to vector<8x384xf32>
    %cst_83 = arith.constant dense<0.000000e+00> : vector<8x384xf32>
    %290 = tpu.matmul %280, %15, %cst_83 {dimension_numbers = #tpu.dot_dimension_numbers<[1], [0], [0], [1], [0, 0, 1, 1], [], []>} : vector<8x128xf32>, vector<128x384xf32>, vector<8x384xf32> -> vector<8x384xf32>
    %291 = vector.extract_strided_slice %289 {offsets = [0, 0], sizes = [8, 128], strides = [1, 1]} : vector<8x384xf32> to vector<8x128xf32>
    %292 = vector.extract_strided_slice %290 {offsets = [0, 0], sizes = [8, 128], strides = [1, 1]} : vector<8x384xf32> to vector<8x128xf32>
    %293 = arith.addf %291, %292 : vector<8x128xf32>
    %294 = arith.negf %293 : vector<8x128xf32>
    %295 = math.exp %294 : vector<8x128xf32>
    %cst_84 = arith.constant 1.000000e+00 : f32
    %296 = vector.broadcast %cst_84 : f32 to vector<8x128xf32>
    %297 = arith.addf %296, %295 : vector<8x128xf32>
    %298 = arith.divf %296, %297 : vector<8x128xf32>
    %299 = vector.extract_strided_slice %289 {offsets = [0, 128], sizes = [8, 128], strides = [1, 1]} : vector<8x384xf32> to vector<8x128xf32>
    %300 = vector.extract_strided_slice %290 {offsets = [0, 128], sizes = [8, 128], strides = [1, 1]} : vector<8x384xf32> to vector<8x128xf32>
    %301 = arith.addf %299, %300 : vector<8x128xf32>
    %302 = arith.negf %301 : vector<8x128xf32>
    %303 = math.exp %302 : vector<8x128xf32>
    %cst_85 = arith.constant 1.000000e+00 : f32
    %304 = vector.broadcast %cst_85 : f32 to vector<8x128xf32>
    %305 = arith.addf %304, %303 : vector<8x128xf32>
    %306 = arith.divf %304, %305 : vector<8x128xf32>
    %307 = vector.extract_strided_slice %289 {offsets = [0, 256], sizes = [8, 128], strides = [1, 1]} : vector<8x384xf32> to vector<8x128xf32>
    %308 = vector.extract_strided_slice %290 {offsets = [0, 256], sizes = [8, 128], strides = [1, 1]} : vector<8x384xf32> to vector<8x128xf32>
    %309 = vector.broadcast %17 : vector<1x128xf32> to vector<8x128xf32>
    %310 = arith.addf %308, %309 : vector<8x128xf32>
    %311 = arith.mulf %298, %310 : vector<8x128xf32>
    %312 = arith.addf %307, %311 : vector<8x128xf32>
    %313 = math.tanh %312 : vector<8x128xf32>
    %cst_86 = arith.constant 1.000000e+00 : f32
    %314 = vector.broadcast %cst_86 : f32 to vector<8x128xf32>
    %315 = arith.subf %314, %306 : vector<8x128xf32>
    %316 = arith.mulf %315, %313 : vector<8x128xf32>
    %317 = arith.mulf %306, %280 : vector<8x128xf32>
    %318 = arith.addf %316, %317 : vector<8x128xf32>
    %319 = arith.index_cast %286 : i32 to index
    %c0_87 = arith.constant 0 : index
    %c0_88 = arith.constant 0 : index
    %320 = vector.load %arg7[%319, %c0_87, %c0_88] : memref<8x8x128xf32, #tpu.memory_space<vmem>>, vector<1x8x128xf32>
    %321 = vector.shape_cast %320 : vector<1x8x128xf32> to vector<8x128xf32>
    %322 = vector.shape_cast %318 : vector<8x128xf32> to vector<1x8x128xf32>
    tpu.vector_store %arg7[%319, %c0_87, %c0_88], %322 {strides = array<i32>} : memref<8x8x128xf32, #tpu.memory_space<vmem>>, vector<1x8x128xf32>,
    %c0_89 = arith.constant 0 : index
    %c0_90 = arith.constant 0 : index
    %323 = vector.load %arg9[%c0_89, %c0_90] : memref<8x128xf32, #tpu.memory_space<vmem>>, vector<8x128xf32>
    tpu.vector_store %arg9[%c0_89, %c0_90], %318 {strides = array<i32>} : memref<8x128xf32, #tpu.memory_space<vmem>>, vector<8x128xf32>,
    %c0_i32_91 = arith.constant 0 : i32
    %324 = arith.cmpi eq, %arg1, %c0_i32_91 : i32
    %325 = arith.extui %324 : i1 to i32
    %c0_i32_92 = arith.constant 0 : i32
    %326 = arith.cmpi ne, %325, %c0_i32_92 : i32
    scf.if %326 {
      %c0_93 = arith.constant 0 : index
      %c0_94 = arith.constant 0 : index
      %c0_95 = arith.constant 0 : index
      %327 = vector.load %arg8[%c0_93, %c0_94, %c0_95] : memref<1x8x128xf32, #tpu.memory_space<vmem>>, vector<1x8x128xf32>
      %328 = vector.shape_cast %327 : vector<1x8x128xf32> to vector<8x128xf32>
      %329 = vector.shape_cast %318 : vector<8x128xf32> to vector<1x8x128xf32>
      tpu.vector_store %arg8[%c0_93, %c0_94, %c0_95], %329 {strides = array<i32>} : memref<1x8x128xf32, #tpu.memory_space<vmem>>, vector<1x8x128xf32>,
    } else {
    }
    return
  }
  func.func @transform_0(%arg0: i32, %arg1: i32) -> (i32, i32, i32) {
    %c2_i32 = arith.constant 2 : i32
    %0 = arith.muli %c2_i32, %arg1 : i32
    %c0_i32 = arith.constant 0 : i32
    %1 = arith.subi %c0_i32, %0 : i32
    %2 = arith.muli %arg0, %1 : i32
    %3 = arith.addi %arg1, %2 : i32
    %c0_i32_0 = arith.constant 0 : i32
    %c0_i32_1 = arith.constant 0 : i32
    %c0_i32_2 = arith.constant 0 : i32
    return %3, %c0_i32_0, %c0_i32_1 : i32, i32, i32
  }
  func.func @transform_1(%arg0: i32, %arg1: i32) -> (i32, i32, i32) {
    %c0_i32 = arith.constant 0 : i32
    %c0_i32_0 = arith.constant 0 : i32
    %c0_i32_1 = arith.constant 0 : i32
    return %arg0, %c0_i32, %c0_i32_0 : i32, i32, i32
  }
  func.func @transform_2(%arg0: i32, %arg1: i32) -> (i32, i32, i32) {
    %c0_i32 = arith.constant 0 : i32
    %c0_i32_0 = arith.constant 0 : i32
    %c0_i32_1 = arith.constant 0 : i32
    return %arg0, %c0_i32, %c0_i32_0 : i32, i32, i32
  }
  func.func @transform_3(%arg0: i32, %arg1: i32) -> (i32, i32, i32) {
    %c0_i32 = arith.constant 0 : i32
    %c0_i32_0 = arith.constant 0 : i32
    %c0_i32_1 = arith.constant 0 : i32
    return %arg0, %c0_i32, %c0_i32_0 : i32, i32, i32
  }
  func.func @transform_4(%arg0: i32, %arg1: i32) -> (i32, i32, i32) {
    %c0_i32 = arith.constant 0 : i32
    %c0_i32_0 = arith.constant 0 : i32
    %c0_i32_1 = arith.constant 0 : i32
    return %arg0, %c0_i32, %c0_i32_0 : i32, i32, i32
  }
  func.func @transform_5(%arg0: i32, %arg1: i32) -> (i32, i32, i32) {
    %c2_i32 = arith.constant 2 : i32
    %0 = arith.muli %c2_i32, %arg1 : i32
    %c0_i32 = arith.constant 0 : i32
    %1 = arith.subi %c0_i32, %0 : i32
    %2 = arith.muli %arg0, %1 : i32
    %3 = arith.addi %arg1, %2 : i32
    %c0_i32_0 = arith.constant 0 : i32
    %c0_i32_1 = arith.constant 0 : i32
    return %3, %c0_i32_0, %arg0 : i32, i32, i32
  }
  func.func @transform_6(%arg0: i32, %arg1: i32) -> (i32, i32, i32) {
    %c0_i32 = arith.constant 0 : i32
    %c0_i32_0 = arith.constant 0 : i32
    %c0_i32_1 = arith.constant 0 : i32
    return %arg0, %c0_i32, %c0_i32_0 : i32, i32, i32
  }
}

</mosaic_0001>

<bundles_post_ra>
// kernel: tpu_custom_call.1
= control target key start
LH: loop header
LB: loop body
LE: loop exit
PB: predicated region body
PF: predicated region fallthrough
CT: control target
= control target key end

     0   :  { %s4833_s0 = inlined_call_operand.hbm [shape: f32[8,8,128], index: 0, kind: input, shape index: {}]   ;;  %s4834_s1 = inlined_call_operand.hbm [shape: f32[2,128,384], index: 1, kind: input, shape index: {}]   ;;  %s4835_s2 = inlined_call_operand.hbm [shape: f32[2,128,384], index: 2, kind: input, shape index: {}]   ;;  %s4836_s3 = inlined_call_operand.vmem [shape: f32[2,1,384], index: 3, kind: input, shape index: {}]   ;;  %s4837_s4 = inlined_call_operand.vmem [shape: f32[2,1,128], index: 4, kind: input, shape index: {}]   ;;  %s4838_s5 = inlined_call_operand.hbm [shape: f32[8,8,256], index: 5, kind: output, shape index: {0}]   ;;  %s4839_s6 = inlined_call_operand.hbm [shape: f32[2,8,128], index: 6, kind: output, shape index: {1}]  }
   0x1   :  { %4855 = sst [smem:[#allocation21_spill]] %s4834_s1 }
   0x2   :  { %12 = vsyncpa [#allocation5], 0 }
   0x3   :  { %14 = vsyncpa [#allocation5 + $0x1], 0 }
   0x4   :  { %15 = vsyncpa [#allocation8], 0 }
   0x5   :  { %17 = vsyncpa [#allocation8 + $0x1], 0 }
   0x6   :  { %18 = vsyncpa [#allocation6], 0 }
   0x7   :  { %20 = vsyncpa [#allocation6 + $0x1], 0 }
   0x8   :  { %21 = vsyncpa [#allocation12], 0 }
   0x9   :  { %23 = vsyncpa [#allocation12 + $0x1], 0  ;;  %s3984_s21 = smov 0   ;;  %s3986_s22 = smov 0  }
   0xa   :  { %s3988_s23 = smov 0   ;;  %s3990_s24 = smov 0  }
   0xb   :  { %s3992_s25 = smov 0   ;;  %s3994_s26 = smov 0  }
   0xc LB: > { %4856 = sst [smem:[#allocation17_spill]] %s3920_s23  ;;  %s4015_s27 = sadd.s32 4294967295, %s3932_s26   ;;  %s3932_s26 = sphi %s3994_s26, %s29_s26   ;;  %s3928_s25 = sphi %s3992_s25, %s4891_s25   ;;  %s3924_s24 = sphi %s3990_s24, %s4890_s24   ;;  %s3920_s23 = sphi %s3988_s23, %s4886_s23   ;;  %s3916_s22 = sphi %s3986_s22, %s4889_s22   ;;  %s3912_s21 = sphi %s3984_s21, %s4888_s21  }
   0xd   : > { %4857 = sst [smem:[#allocation18_spill]] %s3932_s26  ;;  %s2477_s28 = sadd.s32 4294967294, %s3932_s26  }
   0xe   : > { %s41_s29 = sadd.s32 1, %s3928_s25  ;;  %s82_s30 = sadd.s32 1, %s3920_s23 }
   0xf   : > { %p43_p0 = scmp.ge.s32.totalorder %s41_s29, 2  ;;  %p89_p1 = scmp.ne.s32.totalorder %s3920_s23, %s3916_s22 }
  0x10   : > { %p4844_p2 = scmp.eq.s32.totalorder %s3932_s26, 0  ;;  %p95_p3 = scmp.ne.s32.totalorder %s3916_s22, %s3912_s21 }
  0x11   : > { %s4893_s29 = smov (%p43_p0, %s41_s29), 0  ;;  %p4842_p5 = scmp.eq.s32.totalorder %s4015_s27, 0 }
  0x12   : > { %4858 = sst [smem:[#allocation19_spill]] %s4893_s29  ;;  %p4029_p4 = por %p4844_p2, %p89_p1 }
  0x13   : > { %s79_s8 = ssub.s32 %s3928_s25, %s4893_s29  ;;  %p207_p6 = scmp.eq.s32.totalorder %s4015_s27, 1 }
  0x14   : > { %p80_p7 = scmp.eq.s32.totalorder %s79_s8, 0  ;;  %p4039_p8 = por %p4842_p5, %p95_p3 }
  0x15   : > { %p4043_p9 = por %p207_p6, %p89_p1  ;;  %p213_p10 = scmp.eq.s32.totalorder %s2477_s28, 1 }
  0x16   : > { %s4860_s9 = scalar_select %p4039_p8, 1, 0 }
  0x17   : > { %s4861_s10 = scalar_select %p4043_p9, 1, 0 }
  0x18   : > { %s4048_s11 = scalar_select %p80_p7, %s3920_s23, %s82_s30  }
  0x19   : > { %p4050_p11 = por %p213_p10, %p95_p3  ;;  %p4843_p13 = scmp.lt.s32.totalorder %s3932_s26, 2 }
  0x1a   : > { %4862 = sst [smem:[#allocation20_spill]] %s4048_s11  ;;  %s284_s13 = sand.u32 1, %s3932_s26  }
  0x1b   : > { %s4863_s12 = scalar_select %p4050_p11, 1, 0 }
  0x1c   : > { %s286_s14 = sand.u32 1, %s3920_s23   ;;  %s4840_s16 = smul.u32 6144, %s3928_s25 }
  0x1d   : > { %s4058_s15 = smul.u32 384, %s286_s14  ;;  %p4065_p0 = pnand %p4843_p13, %p4029_p4 }
  0x1e   : > { %s4865_s1 = sld [smem:[#allocation21_spill]]  ;;  %s4080_s7 = scalar_lea.sflag [#allocation8], %s284_s13 }
  0x1f   : > { %s4864_s17 = scalar_select %p4065_p0, 1, 0 }
  0x20   : > { %s288_s28 = scalar_lea.vmem [#allocation7], %s4058_s15  ;;  %p4848_p4 = pneg %p4065_p0 }
  0x21   : > { %s295_s30 = sshll.u32 %s288_s28, 4  ;;  %s4077_s30 = int_to_ptr.vmem [resolvable:$true] %s295_s30 }
  0x24   : > { %s4074_s20 = scalar_lea.hbm %s4865_s1, %s4840_s16  ;;  %s3731_s19 = scalar_lea.hbm %s4865_s1, 12288 }
  0x25   : > { %s3726_s8 = scalar_lea.hbm %s4074_s20, 6144  ;;  %p3732_p10 = scmp.lt.u32.totalorder %s4074_s20, %s4865_s1 }
  0x26   : > { %p3727_p3 = scmp.ne.s32.totalorder %s4074_s20, %s3726_s8  ;;  %p3733_p12 = scmp.lt.u32.totalorder %s3731_s19, %s3726_s8 }
  0x27   : > { %p3735_p13 = scmp.lt.u32.totalorder %s3726_s8, %s4074_s20 }
  0x28   : > { %p3729_p6 = pnand %p4848_p4, %p3727_p3  ;;  %p3734_p5 = por %p3733_p12, %p3732_p10 }
  0x2a   : > { %p3730_p7 = pneg %p3729_p6  ;;  %p3736_p2 = por %p3735_p13, %p3734_p5 }
  0x2c   : > { %p3737_p1 = pnand %p3736_p2, %p3730_p7 }
  0x2e   : > { %3740 = shalt.err (!%p3737_p1)
}
  0x2f   : > { %s3741_s13 = scalar_lea.vmem %s4077_s30, 6144  ;;  %s3934_s28 = smov [#allocation7]  }
  0x30   : > { %p3742_p3 = scmp.ne.s32.totalorder %s4077_s30, %s3741_s13  ;;  %s3746_s14 = sshll.u32 %s3934_s28, 4  ;;  %s3747_s14 = int_to_ptr.vmem [resolvable:$false] %s3746_s14 }
  0x31   : > { %s3748_s29 = scalar_lea.vmem %s3747_s14, 12288  ;;  %p3749_p9 = scmp.lt.s32.totalorder %s4077_s30, %s3747_s14 }
  0x32   : > { %p3744_p6 = pnand %p3742_p3, %p4848_p4  ;;  %p3750_p12 = scmp.lt.s32.totalorder %s3748_s29, %s3741_s13 }
  0x34   : > { %p3745_p11 = pneg %p3744_p6  ;;  %p3751_p10 = por %p3750_p12, %p3749_p9 }
  0x36   : > { %p3752_p5 = pnand %p3751_p10, %p3745_p11 }
  0x38   : > { %3755 = shalt.err (!%p3752_p5)
}
  0x39   : > { %s4846_s16 = smov 384   ;;  %s4847_s8 = smov 24  }
  0x3a   : > { %3572 = dma.hbm_to_vmem [thread:$0]  (!%p4065_p0), %s4074_s20, 6144, %s4077_s30, %s4080_s7, %s4846_s16, %s4846_s16, %s4847_s8  }
  0x3b   : > { %p337_p2 = scmp.lt.s32.totalorder %s3932_s26, 3  ;;  %p4866_p13 = scmp.ge.s32.totalorder %s3932_s26, 1 }
  0x3c   : > { %s3937_s19 = smov [#allocation4]   ;;  %p4868_p11 = scmp.eq.s32.totalorder %s3932_s26, 0 }
  0x3d   : > { %p4114_p9 = pnand %p4866_p13, %p337_p2  ;;  %s274_s13 = sshll.u32 %s3937_s19, 4  ;;  %s275_s13 = int_to_ptr.vmem [resolvable:$true] %s274_s13 }
  0x3e   : > { %p4869_p1 = scmp.lt.s32.totalorder %s3932_s26, 2  ;;  %s3756_s20 = scalar_lea.hbm %s4833_s0, 1024 }
  0x3f   : > { %s4867_s18 = scalar_select %p4114_p9, 1, 0 }
  0x40   : > { %p4122_p7 = pnand %p4869_p1, %p4868_p11  ;;  %p3757_p3 = scmp.ne.s32.totalorder %s4833_s0, %s3756_s20 }
  0x41   : > { %p3763_p5 = scmp.lt.u32.totalorder %s3756_s20, %s4833_s0 }
  0x42   : > { %p3758_p6 = pneg %p4122_p7 }
  0x44   : > { %p3759_p12 = pnand %p3758_p6, %p3757_p3 }
  0x46   : > { %p3760_p10 = pneg %p3759_p12 }
  0x48   : > { %p3765_p2 = pnand %p3763_p5, %p3760_p10 }
  0x4a   : > { %3768 = shalt.err (!%p3765_p2)
}
  0x4b   : > { %s3769_s1 = scalar_lea.vmem %s275_s13, 1024  ;;  %s3776_s14 = scalar_lea.vmem %s275_s13, 2048 }
  0x4c   : > { %p3770_p13 = scmp.ne.s32.totalorder %s275_s13, %s3769_s1  ;;  %p3777_p4 = scmp.lt.s32.totalorder %s275_s13, %s275_s13 }
  0x4d   : > { %p3778_p8 = scmp.lt.s32.totalorder %s3776_s14, %s3769_s1 }
  0x4e   : > { %p3772_p11 = pnand %p3770_p13, %p3758_p6 }
  0x4f   : > { %p3779_p9 = por %p3778_p8, %p3777_p4 }
  0x50   : > { %p3773_p1 = pneg %p3772_p11 }
  0x52   : > { %p3780_p0 = pnand %p3779_p9, %p3773_p1 }
  0x54   : > { %3783 = shalt.err (!%p3780_p0)
}
  0x55   : > { %s3938_s16 = smov 128   ;;  %s3939_s29 = smov 8  }
  0x56   : > { %3569 = dma.hbm_to_vmem [thread:$0]  (!%p4122_p7), %s4833_s0, 1024, %s275_s13, [#allocation5], %s3938_s16, %s3938_s16, %s3939_s29  }
  0x57   : > { %s4871_s30 = smul.u32 6144, %s3928_s25  ;;  %s309_s1 = scalar_lea.vmem [#allocation9], %s4058_s15 }
  0x58   : > { %s316_s14 = sshll.u32 %s309_s1, 4  ;;  %p4872_p0 = scmp.ne.s32.totalorder %s4864_s17, 0  ;;  %s4150_s14 = int_to_ptr.vmem [resolvable:$true] %s316_s14 }
  0x59   : > { %s4147_s23 = scalar_lea.hbm %s4835_s2, %s4871_s30  ;;  %s3789_s11 = scalar_lea.hbm %s4835_s2, 12288 }
  0x5a   : > { %s3784_s26 = scalar_lea.hbm %s4147_s23, 6144  ;;  %p4873_p4 = pneg %p4872_p0 }
  0x5b   : > { %p3785_p8 = scmp.ne.s32.totalorder %s4147_s23, %s3784_s26  ;;  %p3790_p3 = scmp.lt.u32.totalorder %s4147_s23, %s4835_s2 }
  0x5c   : > { %p3791_p6 = scmp.lt.u32.totalorder %s3789_s11, %s3784_s26  ;;  %p3793_p10 = scmp.lt.u32.totalorder %s3784_s26, %s4147_s23 }
  0x5d   : > { %p3787_p9 = pnand %p3785_p8, %p4873_p4 }
  0x5e   : > { %p3792_p12 = por %p3791_p6, %p3790_p3 }
  0x5f   : > { %p3788_p7 = pneg %p3787_p9 }
  0x60   : > { %p3794_p5 = por %p3793_p10, %p3792_p12 }
  0x62   : > { %p3795_p2 = pnand %p3794_p5, %p3788_p7 }
  0x64   : > { %3798 = shalt.err (!%p3795_p2)
}
  0x65   : > { %s3799_s15 = scalar_lea.vmem %s4150_s14, 6144  ;;  %p4874_p11 = pmov %p4873_p4 }
  0x66   : > { %p3800_p13 = scmp.ne.s32.totalorder %s4150_s14, %s3799_s15  ;;  %s3940_s8 = smov [#allocation9]  }
  0x67   : > { %s3804_s20 = sshll.u32 %s3940_s8, 4  ;;  %s3805_s20 = int_to_ptr.vmem [resolvable:$false] %s3804_s20 }
  0x68   : > { %p3802_p1 = pnand %p3800_p13, %p4874_p11  ;;  %s3806_s30 = scalar_lea.vmem %s3805_s20, 12288 }
  0x69   : > { %p3807_p4 = scmp.lt.s32.totalorder %s4150_s14, %s3805_s20  ;;  %p3808_p9 = scmp.lt.s32.totalorder %s3806_s30, %s3799_s15 }
  0x6a   : > { %p3803_p8 = pneg %p3802_p1 }
  0x6b   : > { %p3809_p3 = por %p3808_p9, %p3807_p4 }
  0x6d   : > { %p3810_p6 = pnand %p3809_p3, %p3803_p8 }
  0x6f   : > { %3813 = shalt.err (!%p3810_p6)
}
  0x70   : > { %s4875_s26 = smov 24   ;;  %s4876_s19 = smov 384  }
  0x71   : > { %3575 = dma.hbm_to_vmem [thread:$0]  (!%p4872_p0), %s4147_s23, 6144, %s4150_s14, %s4080_s7, %s4876_s19, %s4876_s19, %s4875_s26  }
  0x72   : > { %p4877_p7 = scmp.ne.s32.totalorder %s4867_s18, 0 }
  0x73   : > { %p4878_p12 = scmp.eq.s32.totalorder (!%p4877_p7), %s4015_s27, 0 }
  0x74   : > { %341 = sbr.rel (%p4877_p7) target bundleno = 2313 (0x909), region = 40 }
  0x7b   : > { %3895 = dma.done.wait (%p4878_p12), [#allocation5], 1024   ;;  %p4879_p10 = pmov %p4878_p12 }
  0x7c   : > { %s352_s17 = sand.u32 1, %s4015_s27   ;;  %s4187_s1 = sand.u32 1, %s3916_s22  }
  0x7d   : > { %3897 = vsyncadd (%p4879_p10), [#allocation5], 4294966272  ;;  %s3552_s13 = smul.u32 384, %s4187_s1  ;;  %s353_s28 = scalar_lea.sflag [#allocation8], %s352_s17 }
  0x7e   : > { %p4880_p0 = scmp.ne.s32.totalorder %s4860_s9, 0 }
  0x7f   : > { %s4192_s23 = scalar_lea.vmem [#allocation7], %s3552_s13 }
  0x80   : > { %3899 = dma.done.wait (%p4880_p0), %s353_s28, 12288  }
  0x81   : > { %3901 = vsyncadd (%p4880_p0), %s353_s28, 4294955008  ;;  %v3941_v0 = vmov 0.0   ;;  %v447_v1 = vld [vmem:[%s4192_s23 + $0x8] sm:$0xff]  ;;  %v450_v2 = vld [vmem:[%s4192_s23 + $0x20] sm:$0xff]  ;;  %s4250_s27 = scalar_lea.vmem [#allocation9], %s3552_s13  ;;  %vm3943_vm0 = vmmov 0  }
  0x82   : > { %575 = vmatprep.mubr.f32.mxu0 %v3941_v0  ;;  %v446_v3 = vld [vmem:[%s4192_s23] sm:$0xff]  ;;  %v3036_v4 = vpack.c.bf16 %v450_v2, %v447_v1  ;;  %v449_v5 = vld [vmem:[%s4192_s23 + $0x18] sm:$0xff]  ;;  %v456_v7 = vld [vmem:[%s4192_s23 + $0x50] sm:$0xff]  ;;  %p421_p5 = scmp.lt.s32.totalorder %s3924_s24, 1  ;;  %s2550_s16 = smul.u32 168, %s3924_s24 }
  0x83   : > { %v453_v6 = vld [vmem:[%s4192_s23 + $0x38] sm:$0xff]  ;;  %v3038_v8 = vpack.c.bf16 %v449_v5, %v446_v3  ;;  %v452_v10 = vld [vmem:[%s4192_s23 + $0x30] sm:$0xff]  ;;  %v455_v11 = vld [vmem:[%s4192_s23 + $0x48] sm:$0xff]  ;;  %s2485_s30 = sshll.u32 %s4187_s1, 6  ;;  %s2492_s26 = smul.u32 56, %s3924_s24 }
  0x84   : > { %v3040_v9 = vpack.c.bf16 %v456_v7, %v453_v6  ;;  %v459_v12 = vld [vmem:[%s4192_s23 + $0x68] sm:$0xff]  ;;  %3037 = vmatprep.subr.bf16.mxu0 %v3036_v4  ;;  %v462_v13 = vld [vmem:[%s4192_s23 + $0x80] sm:$0xff]  ;;  %v3042_v14 = vpack.c.bf16 %v455_v11, %v452_v10  ;;  %v461_v17 = vld [vmem:[%s4192_s23 + $0x78] sm:$0xff]  ;;  %s4434_s9 = scalar_select %p421_p5, %s3924_s24, 1 }
  0x85   : > { %3039 = vmatpush1.bf16.msra.mxu0 %v3038_v8  ;;  %v458_v15 = vld [vmem:[%s4192_s23 + $0x60] sm:$0xff]  ;;  %v3044_v16 = vpack.c.bf16 %v462_v13, %v459_v12  ;;  %v448_v18 = vld [vmem:[%s4192_s23 + $0x10] sm:$0xff]  ;;  %v451_v19 = vld [vmem:[%s4192_s23 + $0x28] sm:$0xff]  ;;  %s806_s29 = scalar_lea.vmem [#allocation3], %s2550_s16  ;;  %s4470_s19 = scalar_lea.vmem [#allocation10], %s2485_s30 }
  0x86   : > { %3041 = vmatprep.subr.bf16.mxu0 %v3040_v9  ;;  %v465_v20 = vld [vmem:[%s4192_s23 + $0x98] sm:$0xff]  ;;  %v468_v21 = vld [vmem:[%s4192_s23 + $0xb0] sm:$0xff]  ;;  %v3068_v22 = vpack.c.bf16 %v451_v19, %v448_v18  ;;  %v454_v23 = vld [vmem:[%s4192_s23 + $0x40] sm:$0xff]  ;;  %v3046_v25 = vpack.c.bf16 %v461_v17, %v458_v15  ;;  %s3553_s7 = smul.u32 3, %s4434_s9  ;;  %s427_s20 = scalar_lea.vmem %s4837_s4, %s4434_s9 }
  0x87   : > { %v457_v24 = vld [vmem:[%s4192_s23 + $0x58] sm:$0xff]  ;;  %v464_v26 = vld [vmem:[%s4192_s23 + $0x90] sm:$0xff]  ;;  %v3048_v28 = vpack.c.bf16 %v468_v21, %v465_v20  ;;  %v467_v29 = vld [vmem:[%s4192_s23 + $0xa8] sm:$0xff]  ;;  %s980_s17 = scalar_lea.vmem %s4470_s19, %s2492_s26 [#allocation10]  ;;  %s2493_s13 = smul.u32 120, %s3924_s24 }
  0x88   : > { %3069 = vmatprep.subr.bf16.mxu1 %v3068_v22  ;;  %v3072_v27 = vpack.c.bf16 %v457_v24, %v454_v23  ;;  %v460_v30 = vld [vmem:[%s4192_s23 + $0x70] sm:$0xff]  ;;  %v463_v31 = vld [vmem:[%s4192_s23 + $0x88] sm:$0xff]  ;;  %v474_v33 = vld [vmem:[%s4192_s23 + $0xe0] sm:$0xff]  ;;  %v3050_v37 = vpack.c.bf16 %v467_v29, %v464_v26  ;;  %s424_s11 = scalar_lea.vmem %s4836_s3, %s3553_s7  ;;  %s2501_s9 = smul.u32 72, %s3924_s24 }
  0x89   : > { %3043 = vmatpush1.bf16.msra.mxu0 %v3042_v14  ;;  %3071 = vmatpush3.bf16.msra.mxu1 %v3068_v22  ;;  %v471_v32 = vld [vmem:[%s4192_s23 + $0xc8] sm:$0xff]  ;;  %v3076_v34 = vpack.c.bf16 %v463_v31, %v460_v30  ;;  %v466_v35 = vld [vmem:[%s4192_s23 + $0xa0] sm:$0xff]  ;;  %v469_v36 = vld [vmem:[%s4192_s23 + $0xb8] sm:$0xff]  ;;  %s2338_s28 = scalar_lea.vmem [#allocation3], %s2493_s13  ;;  %s2507_s18 = smul.u32 24, %s3924_s24 }
  0x8a   : > { %3045 = vmatprep.subr.bf16.mxu0 %v3044_v16  ;;  %3073 = vmatprep.subr.bf16.mxu1 %v3072_v27  ;;  %v3052_v38 = vpack.c.bf16 %v474_v33, %v471_v32  ;;  %v470_v39 = vld [vmem:[%s4192_s23 + $0xc0] sm:$0xff]  ;;  %v473_v40 = vld [vmem:[%s4192_s23 + $0xd8] sm:$0xff]  ;;  %v480_v42 = vld [vmem:[%s4192_s23 + $0x110] sm:$0xff]  ;;  %v3080_v43 = vpack.c.bf16 %v469_v36, %v466_v35  ;;  %v3942_v33 = vmov 0.0|0.0   ;;  %s2346_s7 = scalar_lea.vmem [#allocation3], %s2501_s9  ;;  %s2514_s16 = sshll.u32 %s3924_s24, 3 }
  0x8b   : > { %v477_v41 = vld [vmem:[%s4192_s23 + $0xf8] sm:$0xff]  ;;  %v4229_v44 = vld [vmem:[#allocation4] sm:$0xff]  ;;  %v472_v45 = vld [vmem:[%s4192_s23 + $0xd0] sm:$0xff]  ;;  %v3054_v47 = vpack.c.bf16 %v473_v40, %v470_v39  ;;  %s2350_s14 = scalar_lea.vmem %s4470_s19, %s2507_s18 [#allocation10]  ;;  %s1503_s15 = ssub.s32 4, %s3924_s24 }
  0x8c   : > { %v475_v46 = vld [vmem:[%s4192_s23 + $0xe8] sm:$0xff]  ;;  %2744 = vmatprep.mubr.f32.mxu1 %v4229_v44  ;;  %v3056_v48 = vpack.c.bf16 %v480_v42, %v477_v41  ;;  %v476_v49 = vld [vmem:[%s4192_s23 + $0xf0] sm:$0xff]  ;;  %v486_v52 = vld [vmem:[%s4192_s23 + $0x140] sm:$0xff]  ;;  %s2551_s8 = smul.u32 24, %s1503_s15  ;;  %s2519_s30 = sshll.u32 %s1503_s15, 3 }
  0x8d   : > { %3047 = vmatpush1.bf16.msra.mxu0 %v3046_v25  ;;  %3075 = vmatpush3.bf16.msra.mxu1 %v3072_v27  ;;  %v479_v50 = vld [vmem:[%s4192_s23 + $0x108] sm:$0xff]  ;;  %v3084_v53 = vpack.c.bf16 %v475_v46, %v472_v45  ;;  %v478_v54 = vld [vmem:[%s4192_s23 + $0x100] sm:$0xff]  ;;  %v481_v55 = vld [vmem:[%s4192_s23 + $0x118] sm:$0xff]  ;;  %s1674_s26 = scalar_lea.vmem %s4470_s19, %s2519_s30 [#allocation10]  ;;  %s2546_s15 = sshll.u32 %s3924_s24, 7 }
  0x8e   : > { %3049 = vmatprep.subr.bf16.mxu0 %v3048_v28  ;;  %3077 = vmatprep.subr.bf16.mxu1 %v3076_v34  ;;  %v483_v51 = vld [vmem:[%s4192_s23 + $0x128] sm:$0xff]  ;;  %v3058_v56 = vpack.c.bf16 %v479_v50, %v476_v49  ;;  %v482_v58 = vld [vmem:[%s4192_s23 + $0x120] sm:$0xff]  ;;  %v485_v59 = vld [vmem:[%s4192_s23 + $0x138] sm:$0xff]  ;;  %v3088_v62 = vpack.c.bf16 %v481_v55, %v478_v54  ;;  %p4881_p13 = scmp.ne.s32.totalorder %s4861_s10, 0 }
  0x8f   : > { %v3060_v57 = vpack.c.bf16 %v486_v52, %v483_v51  ;;  %v489_v60 = vld [vmem:[%s4192_s23 + $0x158] sm:$0xff]  ;;  %v492_v61 = vld [vmem:[%s4192_s23 + $0x170] sm:$0xff]  ;;  %v487_v1 = vld [vmem:[%s4192_s23 + $0x148] sm:$0xff]  ;;  %v3062_v2 = vpack.c.bf16 %v485_v59, %v482_v58 }
  0x90   : > { %v484_v63 = vld [vmem:[%s4192_s23 + $0x130] sm:$0xff]  ;;  %v3064_v3 = vpack.c.bf16 %v492_v61, %v489_v60  ;;  %v491_v5 = vld [vmem:[%s4192_s23 + $0x168] sm:$0xff]  ;;  %v757_v7 = vld [vmem:[%s4250_s27 + $0x20] sm:$0xff] }
  0x91   : > { %3051 = vmatpush1.bf16.msra.mxu0 %v3050_v37  ;;  %3079 = vmatpush3.bf16.msra.mxu1 %v3076_v34  ;;  %v488_v4 = vld [vmem:[%s4192_s23 + $0x150] sm:$0xff]  ;;  %v754_v6 = vld [vmem:[%s4250_s27 + $0x8] sm:$0xff]  ;;  %v3092_v8 = vpack.c.bf16 %v487_v1, %v484_v63  ;;  %v490_v9 = vld [vmem:[%s4192_s23 + $0x160] sm:$0xff] }
  0x92   : > { %3053 = vmatprep.subr.bf16.mxu0 %v3052_v38  ;;  %3081 = vmatprep.subr.bf16.mxu1 %v3080_v43  ;;  %v493_v10 = vld [vmem:[%s4192_s23 + $0x178] sm:$0xff]  ;;  %v3066_v11 = vpack.c.bf16 %v491_v5, %v488_v4  ;;  %v4256_v12 = vpack.c.bf16 %v757_v7, %v754_v6  ;;  %v753_v13 = vld [vmem:[%s4250_s27] sm:$0xff]  ;;  %v763_v16 = vld [vmem:[%s4250_s27 + $0x50] sm:$0xff]  ;;  %s2499_s23 = smul.u32 40, %s3924_s24 }
  0x93   : > { %v756_v14 = vld [vmem:[%s4250_s27 + $0x18] sm:$0xff]  ;;  %v3096_v17 = vpack.c.bf16 %v493_v10, %v490_v9  ;;  %v759_v20 = vld [vmem:[%s4250_s27 + $0x30] sm:$0xff]  ;;  %v762_v21 = vld [vmem:[%s4250_s27 + $0x48] sm:$0xff] }
  0x94   : > { %v760_v15 = vld [vmem:[%s4250_s27 + $0x38] sm:$0xff]  ;;  %v4262_v18 = vpack.c.bf16 %v756_v14, %v753_v13  ;;  %v766_v22 = vld [vmem:[%s4250_s27 + $0x68] sm:$0xff]  ;;  %v769_v23 = vld [vmem:[%s4250_s27 + $0x80] sm:$0xff]  ;;  %v4276_v27 = vpack.c.bf16 %v762_v21, %v759_v20 }
  0x95   : > { %3055 = vmatpush1.bf16.msra.mxu0 %v3054_v47  ;;  %3083 = vmatpush3.bf16.msra.mxu1 %v3080_v43  ;;  %v4265_v19 = vpack.c.bf16 %v763_v16, %v760_v15  ;;  %v755_v24 = vld [vmem:[%s4250_s27 + $0x10] sm:$0xff]  ;;  %v758_v25 = vld [vmem:[%s4250_s27 + $0x28] sm:$0xff]  ;;  %v4279_v28 = vpack.c.bf16 %v769_v23, %v766_v22  ;;  %v765_v29 = vld [vmem:[%s4250_s27 + $0x60] sm:$0xff] }
  0x96   : > { %3057 = vmatprep.subr.bf16.mxu0 %v3056_v48  ;;  %3085 = vmatprep.subr.bf16.mxu1 %v3084_v53  ;;  %v439_v26 = vld [vmem:[#allocation4 + $0x8] sm:$0xff]  ;;  %v768_v30 = vld [vmem:[%s4250_s27 + $0x78] sm:$0xff]  ;;  %v775_v32 = vld [vmem:[%s4250_s27 + $0xb0] sm:$0xff]  ;;  %v4286_v34 = vpack.c.bf16 %v758_v25, %v755_v24 }
  0x97   : > { %v772_v31 = vld [vmem:[%s4250_s27 + $0x98] sm:$0xff]  ;;  %v761_v35 = vld [vmem:[%s4250_s27 + $0x40] sm:$0xff]  ;;  %v440_v37 = vld [vmem:[#allocation4 + $0x10] sm:$0xff]  ;;  %v4292_v38 = vpack.c.bf16 %v768_v30, %v765_v29 }
  0x98   : > { %v764_v36 = vld [vmem:[%s4250_s27 + $0x58] sm:$0xff]  ;;  %v4295_v39 = vpack.c.bf16 %v775_v32, %v772_v31  ;;  %v771_v40 = vld [vmem:[%s4250_s27 + $0x90] sm:$0xff]  ;;  %v774_v41 = vld [vmem:[%s4250_s27 + $0xa8] sm:$0xff] }
  0x99   : > { %3059 = vmatpush1.bf16.msra.mxu0 %v3058_v56  ;;  %3087 = vmatpush3.bf16.msra.mxu1 %v3084_v53  ;;  %v778_v42 = vld [vmem:[%s4250_s27 + $0xc8] sm:$0xff]  ;;  %v781_v43 = vld [vmem:[%s4250_s27 + $0xe0] sm:$0xff]  ;;  %v767_v45 = vld [vmem:[%s4250_s27 + $0x70] sm:$0xff]  ;;  %v4309_v48 = vpack.c.bf16 %v774_v41, %v771_v40 }
  0x9a   : > { %3061 = vmatprep.subr.bf16.mxu0 %v3060_v57  ;;  %3089 = vmatprep.subr.bf16.mxu1 %v3088_v62  ;;  %v770_v46 = vld [vmem:[%s4250_s27 + $0x88] sm:$0xff]  ;;  %v441_v47 = vld [vmem:[#allocation4 + $0x18] sm:$0xff]  ;;  %v442_v49 = vld [vmem:[#allocation4 + $0x20] sm:$0xff]  ;;  %v4312_v50 = vpack.c.bf16 %v781_v43, %v778_v42 }
  0x9b   : > { %v777_v51 = vld [vmem:[%s4250_s27 + $0xc0] sm:$0xff]  ;;  %v780_v52 = vld [vmem:[%s4250_s27 + $0xd8] sm:$0xff]  ;;  %v787_v54 = vld [vmem:[%s4250_s27 + $0x110] sm:$0xff]  ;;  %v4319_v55 = vpack.c.bf16 %v770_v46, %v767_v45 }
  0x9c   : > { %v784_v53 = vld [vmem:[%s4250_s27 + $0xf8] sm:$0xff]  ;;  %v773_v56 = vld [vmem:[%s4250_s27 + $0xa0] sm:$0xff]  ;;  %v443_v58 = vld [vmem:[#allocation4 + $0x28] sm:$0xff]  ;;  %v4326_v59 = vpack.c.bf16 %v780_v52, %v777_v51 }
  0x9d   : > { %3063 = vmatpush1.bf16.msra.mxu0 %v3062_v2  ;;  %3091 = vmatpush3.bf16.msra.mxu1 %v3088_v62  ;;  %v776_v57 = vld [vmem:[%s4250_s27 + $0xb8] sm:$0xff]  ;;  %v444_v60 = vld [vmem:[#allocation4 + $0x30] sm:$0xff]  ;;  %v4329_v61 = vpack.c.bf16 %v787_v54, %v784_v53  ;;  %v786_v63 = vld [vmem:[%s4250_s27 + $0x108] sm:$0xff] }
  0x9e   : > { %3065 = vmatprep.subr.bf16.mxu0 %v3064_v3  ;;  %3093 = vmatprep.subr.bf16.mxu1 %v3092_v8  ;;  %v783_v62 = vld [vmem:[%s4250_s27 + $0xf0] sm:$0xff]  ;;  %v445_v1 = vld [vmem:[#allocation4 + $0x38] sm:$0xff]  ;;  %v790_v2 = vld [vmem:[%s4250_s27 + $0x128] sm:$0xff]  ;;  %v4336_v4 = vpack.c.bf16 %v776_v57, %v773_v56 }
  0x9f   : > { %v793_v3 = vld [vmem:[%s4250_s27 + $0x140] sm:$0xff]  ;;  %v779_v5 = vld [vmem:[%s4250_s27 + $0xd0] sm:$0xff]  ;;  %v782_v6 = vld [vmem:[%s4250_s27 + $0xe8] sm:$0xff]  ;;  %v4343_v7 = vpack.c.bf16 %v786_v63, %v783_v62 }
  0xa0   : > { %v789_v9 = vld [vmem:[%s4250_s27 + $0x120] sm:$0xff]  ;;  %v792_v10 = vld [vmem:[%s4250_s27 + $0x138] sm:$0xff]  ;;  %v799_v13 = vld [vmem:[%s4250_s27 + $0x170] sm:$0xff]  ;;  %v4353_v14 = vpack.c.bf16 %v782_v6, %v779_v5 }
  0xa1   : > { %3067 = vmatpush1.bf16.msra.mxu0 %v3066_v11  ;;  %3095 = vmatpush3.bf16.msra.mxu1 %v3092_v8  ;;  %v4346_v8 = vpack.c.bf16 %v793_v3, %v790_v2  ;;  %v796_v11 = vld [vmem:[%s4250_s27 + $0x158] sm:$0xff]  ;;  %v785_v15 = vld [vmem:[%s4250_s27 + $0x100] sm:$0xff]  ;;  %v795_v21 = vld [vmem:[%s4250_s27 + $0x150] sm:$0xff] }
  0xa2   : > { %3101 = vmatprep.subr.bf16.mxu0 %v4256_v12  ;;  %3097 = vmatprep.subr.bf16.mxu1 %v3096_v17  ;;  %v788_v16 = vld [vmem:[%s4250_s27 + $0x118] sm:$0xff]  ;;  %v4365_v20 = vpack.c.bf16 %v799_v13, %v796_v11  ;;  %v798_v22 = vld [vmem:[%s4250_s27 + $0x168] sm:$0xff]  ;;  %v791_v24 = vld [vmem:[%s4250_s27 + $0x130] sm:$0xff] }
  0xa3   : > { %v4370_v23 = vpack.c.bf16 %v788_v16, %v785_v15  ;;  %v794_v25 = vld [vmem:[%s4250_s27 + $0x148] sm:$0xff]  ;;  %v797_v30 = vld [vmem:[%s4250_s27 + $0x160] sm:$0xff]  ;;  %v800_v31 = vld [vmem:[%s4250_s27 + $0x178] sm:$0xff]  ;;  %s2342_s27 = scalar_lea.vmem %s4470_s19, %s2499_s23 [#allocation10] }
  0xa4   : > { %576 = vmatmul.mubr.f32.vlgmr.msra.gmra.mrb[0].mxu0 %v4229_v44  ;;  %v4302_v44 = vpack.c.bf16 %v764_v36, %v761_v35  ;;  %v4381_v29 = vpack.c.bf16 %v794_v25, %v791_v24  ;;  %v4390_v32 = vpack.c.bf16 %v800_v31, %v797_v30  ;;  %v496_v35 = vlaneseq  ;;  %v494_v40 = vld [vmem:[%s424_s11] sm:$0x7]  ;;  %s2353_s11 = scalar_lea.vmem [#allocation3], %s2507_s18 }
  0xa5   : > { %581 = vmatprep.mubr.f32.mxu0 %v3941_v0  ;;  %3103 = vmatpush1.bf16.msra.mxu0 %v4262_v18 }
  0xa6   : > { %3105 = vmatprep.subr.bf16.mxu0 %v4265_v19  ;;  %3099 = vmatpush3.bf16.msra.mxu1 %v3096_v17  ;;  %v4362_v17 = vpack.c.bf16 %v792_v10, %v789_v9  ;;  %v497_v36 = vshrl.u32 %v496_v35, 7 }
  0xa7   : > { %3132 = vmatprep.subr.bf16.mxu1 %v3942_v33 }
  0xa8   : > { %582 = vmatmul.mubr.f32.gmra.mrb[2].mxu0 %v439_v26  ;;  %v502_v41 = vsub.s32 1, %v497_v36  ;;  %v506_v45 = vsub.s32 2, %v497_v36 }
  0xa9   : > { %587 = vmatprep.mubr.f32.mxu0 %v3941_v0  ;;  %3107 = vmatpush1.bf16.msra.mxu0 %v4276_v27 }
  0xaa   : > { %3109 = vmatprep.subr.bf16.mxu0 %v4279_v28  ;;  %2745 = vmatmul.mubr.f32.vlgmr.msra.gmra.mrb[0].mxu1 %v439_v26  ;;  %v4377_v26 = vpack.c.bf16 %v798_v22, %v795_v21  ;;  %v4442_v43 = vrot.slane %v494_v40, %v502_v41  ;;  %v507_v52 = vrot.slane %v494_v40, %v506_v45 }
  0xab   : > { %2747 = vmatprep.mubr.f32.mxu1 %v440_v37  ;;  %3134 = vmatpush3.bf16.msra.mxu1 %v4286_v34 }
  0xac   : > { %588 = vmatmul.mubr.f32.gmra.mrb[4].mxu0 %v440_v37  ;;  %3135 = vmatprep.subr.bf16.mxu1 %v3942_v33  ;;  %v498_v37 = vsub.s32 0, %v497_v36 }
  0xad   : > { %593 = vmatprep.mubr.f32.mxu0 %v3941_v0  ;;  %3111 = vmatpush1.bf16.msra.mxu0 %v4292_v38 }
  0xae   : > { %3113 = vmatprep.subr.bf16.mxu0 %v4295_v39  ;;  %2748 = vmatmul.mubr.f32.gmra.mrb[2].mxu1 %v441_v47  ;;  %v4440_v42 = vrot.slane %v494_v40, %v498_v37 }
  0xaf   : > { %2750 = vmatprep.mubr.f32.mxu1 %v442_v49  ;;  %3137 = vmatpush3.bf16.msra.mxu1 %v4302_v44 }
  0xb0   : > { %594 = vmatmul.mubr.f32.gmra.mrb[6].mxu0 %v441_v47  ;;  %3138 = vmatprep.subr.bf16.mxu1 %v3942_v33 }
  0xb1   : > { %599 = vmatprep.mubr.f32.mxu0 %v3941_v0  ;;  %3115 = vmatpush1.bf16.msra.mxu0 %v4309_v48 }
  0xb2   : > { %3117 = vmatprep.subr.bf16.mxu0 %v4312_v50  ;;  %2751 = vmatmul.mubr.f32.gmra.mrb[4].mxu1 %v443_v58 }
  0xb3   : > { %2753 = vmatprep.mubr.f32.mxu1 %v444_v60  ;;  %3140 = vmatpush3.bf16.msra.mxu1 %v4319_v55 }
  0xb4   : > { %600 = vmatmul.mubr.f32.gmra.mrb[8].mxu0 %v442_v49  ;;  %3141 = vmatprep.subr.bf16.mxu1 %v3942_v33 }
  0xb5   : > { %605 = vmatprep.mubr.f32.mxu0 %v3941_v0  ;;  %3119 = vmatpush1.bf16.msra.mxu0 %v4326_v59 }
  0xb6   : > { %3121 = vmatprep.subr.bf16.mxu0 %v4329_v61  ;;  %2754 = vmatmul.mubr.f32.gmra.mrb[6].mxu1 %v445_v1 }
  0xb7   : > { %3143 = vmatpush3.bf16.msra.mxu1 %v4336_v4  ;;  %2788 = vmatprep.mubr.msk.f32.mxu1 %vm3943_vm0, %v3941_v0 }
  0xb8   : > { %606 = vmatmul.mubr.f32.gmra.mrb[10].mxu0 %v443_v58  ;;  %3144 = vmatprep.subr.bf16.mxu1 %v3942_v33 }
  0xb9   : > { %611 = vmatprep.mubr.f32.mxu0 %v3941_v0  ;;  %3123 = vmatpush1.bf16.msra.mxu0 %v4343_v7 }
  0xba   : > { %3125 = vmatprep.subr.bf16.mxu0 %v4346_v8 }
  0xbb   : > { %3146 = vmatpush3.bf16.msra.mxu1 %v4353_v14 }
  0xbc   : > { %612 = vmatmul.mubr.f32.gmra.mrb[12].mxu0 %v444_v60  ;;  %3147 = vmatprep.subr.bf16.mxu1 %v3942_v33 }
  0xbd   : > { %617 = vmatprep.mubr.f32.mxu0 %v3941_v0  ;;  %3127 = vmatpush1.bf16.msra.mxu0 %v4362_v17 }
  0xbe   : > { %3129 = vmatprep.subr.bf16.mxu0 %v4365_v20 }
  0xbf   : > { %3149 = vmatpush3.bf16.msra.mxu1 %v4370_v23 }
  0xc0   : > { %618 = vmatmul.mubr.f32.gmra.mrb[14].mxu0 %v445_v1  ;;  %3150 = vmatprep.subr.bf16.mxu1 %v3942_v33 }
  0xc1   : > { %3131 = vmatpush1.bf16.msra.mxu0 %v4377_v26  ;;  %874 = vmatprep.mubr.f32.mxu0 %v3941_v0 }
  0xc2   : > { %3157 = vmatprep.subr.bf16.mxu0 %v4256_v12 }
  0xc3   : > { %3152 = vmatpush3.bf16.msra.mxu1 %v4381_v29 }
  0xc4   : > { %875 = vmatmul.mubr.f32.vlgmr.msra.gmra.mrb[16].mxu0 %v3941_v0  ;;  %3153 = vmatprep.subr.bf16.mxu1 %v3942_v33 }
  0xc5   : > { %3159 = vmatpush1.bf16.msra.mxu0 %v4262_v18  ;;  %1054 = vmatprep.mubr.f32.mxu0 %v3941_v0 }
  0xc6   : > { %3161 = vmatprep.subr.bf16.mxu0 %v4265_v19 }
  0xc7   : > { %3155 = vmatpush3.bf16.msra.mxu1 %v4390_v32 }
  0xc8   : > { %3188 = vmatprep.subr.bf16.mxu1 %v3942_v33 }
  0xc9   : > { %3163 = vmatpush1.bf16.msra.mxu0 %v4276_v27 }
  0xca   : > { %2789 = vmatmul.mubr.f32.vlgmr.msra.gmra.mrb[8].mxu1 %v3941_v0  ;;  %3165 = vmatprep.subr.bf16.mxu0 %v4279_v28 }
  0xcb   : > { %3190 = vmatpush3.bf16.msra.mxu1 %v4286_v34  ;;  %2823 = vmatprep.mubr.msk.f32.mxu1 %vm3943_vm0, %v3941_v0 }
  0xcc   : > { %3191 = vmatprep.subr.bf16.mxu1 %v3942_v33 }
  0xcd   : > { %3167 = vmatpush1.bf16.msra.mxu0 %v4292_v38 }
  0xce   : > { %3169 = vmatprep.subr.bf16.mxu0 %v4295_v39 }
  0xcf   : > { %3193 = vmatpush3.bf16.msra.mxu1 %v4302_v44 }
  0xd0   : > { %3194 = vmatprep.subr.bf16.mxu1 %v3942_v33 }
  0xd1   : > { %3171 = vmatpush1.bf16.msra.mxu0 %v4309_v48 }
  0xd2   : > { %3173 = vmatprep.subr.bf16.mxu0 %v4312_v50 }
  0xd3   : > { %3196 = vmatpush3.bf16.msra.mxu1 %v4319_v55 }
  0xd4   : > { %3197 = vmatprep.subr.bf16.mxu1 %v3942_v33 }
  0xd5   : > { %3175 = vmatpush1.bf16.msra.mxu0 %v4326_v59 }
  0xd6   : > { %3177 = vmatprep.subr.bf16.mxu0 %v4329_v61 }
  0xd7   : > { %3199 = vmatpush3.bf16.msra.mxu1 %v4336_v4 }
  0xd8   : > { %3200 = vmatprep.subr.bf16.mxu1 %v3942_v33 }
  0xd9   : > { %3179 = vmatpush1.bf16.msra.mxu0 %v4343_v7 }
  0xda   : > { %3181 = vmatprep.subr.bf16.mxu0 %v4346_v8 }
  0xdb   : > { %3202 = vmatpush3.bf16.msra.mxu1 %v4353_v14 }
  0xdc   : > { %3203 = vmatprep.subr.bf16.mxu1 %v3942_v33 }
  0xdd   : > { %3183 = vmatpush1.bf16.msra.mxu0 %v4362_v17 }
  0xde   : > { %3185 = vmatprep.subr.bf16.mxu0 %v4365_v20 }
  0xdf   : > { %3205 = vmatpush3.bf16.msra.mxu1 %v4370_v23 }
  0xe0   : > { %3206 = vmatprep.subr.bf16.mxu1 %v3942_v33 }
  0xe1   : > { %3187 = vmatpush1.bf16.msra.mxu0 %v4377_v26 }
  0xe2   : > { %3213 = vmatprep.subr.bf16.mxu0 %v4256_v12 }
  0xe3   : > { %3208 = vmatpush3.bf16.msra.mxu1 %v4381_v29 }
  0xe4   : > { %3209 = vmatprep.subr.bf16.mxu1 %v3942_v33 }
  0xe7   : > { %3211 = vmatpush3.bf16.msra.mxu1 %v4390_v32 }
  0xe8   : > { %3244 = vmatprep.subr.bf16.mxu1 %v3942_v33 }
 0x177   : > { %v577_v46 = vpop.f32.mrb[0].mxu0 }
 0x178   : > { %v578_v47 = vadd.f32 %v577_v46, %v4440_v42  ;;  %v579_v49 = vpop.f32.mrb[1].mxu0 }
 0x179   : > { %v580_v51 = vadd.f32 %v579_v49, %v4442_v43 }
 0x17a   : > { %729 = vst [vmem:[#allocation3] sm:$0xff] %v578_v47 }
 0x17b   : > { %730 = vst [vmem:[#allocation3 + $0x8] sm:$0xff] %v580_v51  ;;  %v583_v53 = vpop.f32.mrb[2].mxu0 }
 0x17c   : > { %v584_v54 = vadd.f32 %v583_v53, %v4440_v42  ;;  %v585_v56 = vpop.f32.mrb[3].mxu0 }
 0x17d   : > { %v586_v57 = vadd.f32 %v585_v56, %v4442_v43  ;;  %v2746_v58 = vpop.f32.mrb[0].mxu1 }
 0x17e   : > { %732 = vst [vmem:[#allocation3 + $0x18] sm:$0xff] %v584_v54  ;;  %v696_v60 = vadd.f32 %v2746_v58, %v507_v52  ;;  %v690_v62 = vpop.f32.mrb[1].mxu1 }
 0x17f   : > { %733 = vst [vmem:[#allocation3 + $0x20] sm:$0xff] %v586_v57  ;;  %v589_v63 = vpop.f32.mrb[4].mxu0  ;;  %v691_v1 = vadd.f32 %v690_v62, %v507_v52 }
 0x180   : > { %v590_v2 = vadd.f32 %v589_v63, %v4440_v42  ;;  %v591_v3 = vpop.f32.mrb[5].mxu0  ;;  %734 = vst [vmem:[#allocation3 + $0x28] sm:$0xff] %v696_v60 }
 0x181   : > { %v592_v5 = vadd.f32 %v591_v3, %v4442_v43  ;;  %731 = vst [vmem:[#allocation3 + $0x10] sm:$0xff] %v691_v1  ;;  %v2749_v6 = vpop.f32.mrb[2].mxu1 }
 0x182   : > { %735 = vst [vmem:[#allocation3 + $0x30] sm:$0xff] %v590_v2  ;;  %v706_v9 = vadd.f32 %v2749_v6, %v507_v52  ;;  %v700_v10 = vpop.f32.mrb[3].mxu1 }
 0x183   : > { %736 = vst [vmem:[#allocation3 + $0x38] sm:$0xff] %v592_v5  ;;  %v595_v11 = vpop.f32.mrb[6].mxu0  ;;  %v701_v13 = vadd.f32 %v700_v10, %v507_v52 }
 0x184   : > { %v596_v15 = vadd.f32 %v595_v11, %v4440_v42  ;;  %v597_v16 = vpop.f32.mrb[7].mxu0  ;;  %740 = vst [vmem:[#allocation3 + $0x58] sm:$0xff] %v706_v9 }
 0x185   : > { %v598_v21 = vadd.f32 %v597_v16, %v4442_v43  ;;  %737 = vst [vmem:[#allocation3 + $0x40] sm:$0xff] %v701_v13  ;;  %v2752_v22 = vpop.f32.mrb[4].mxu1 }
 0x186   : > { %738 = vst [vmem:[#allocation3 + $0x48] sm:$0xff] %v596_v15  ;;  %v716_v24 = vadd.f32 %v2752_v22, %v507_v52  ;;  %v710_v25 = vpop.f32.mrb[5].mxu1 }
 0x187   : > { %739 = vst [vmem:[#allocation3 + $0x50] sm:$0xff] %v598_v21  ;;  %v601_v30 = vpop.f32.mrb[8].mxu0  ;;  %v711_v31 = vadd.f32 %v710_v25, %v507_v52  ;;  %v4465_v21 = vld [vmem:[%s427_s20] ss:$0 sm:$0xff]  ;;  %s1506_s20 = scalar_lea.vmem [#allocation3], %s2551_s8  ;;  %s2228_s8 = sshll.u32 %s4470_s19, 4  ;;  %s4755_s8 = int_to_ptr.vmem [resolvable:$true] %s2228_s8 }
 0x188   : > { %v602_v35 = vadd.f32 %v601_v30, %v4440_v42  ;;  %v603_v36 = vpop.f32.mrb[9].mxu0  ;;  %746 = vst [vmem:[#allocation3 + $0x88] sm:$0xff] %v716_v24 }
 0x189   : > { %v604_v37 = vadd.f32 %v603_v36, %v4442_v43  ;;  %743 = vst [vmem:[#allocation3 + $0x70] sm:$0xff] %v711_v31  ;;  %v2755_v40 = vpop.f32.mrb[6].mxu1 }
 0x18a   : > { %741 = vst [vmem:[#allocation3 + $0x60] sm:$0xff] %v602_v35  ;;  %v726_v41 = vadd.f32 %v2755_v40, %v507_v52  ;;  %v720_v45 = vpop.f32.mrb[7].mxu1 }
 0x18b   : > { %742 = vst [vmem:[#allocation3 + $0x68] sm:$0xff] %v604_v37  ;;  %v607_v46 = vpop.f32.mrb[10].mxu0  ;;  %v721_v47 = vadd.f32 %v720_v45, %v507_v52 }
 0x18c   : > { %v608_v49 = vadd.f32 %v607_v46, %v4440_v42  ;;  %v609_v51 = vpop.f32.mrb[11].mxu0  ;;  %752 = vst [vmem:[#allocation3 + $0xb8] sm:$0xff] %v726_v41 }
 0x18d   : > { %v610_v53 = vadd.f32 %v609_v51, %v4442_v43  ;;  %749 = vst [vmem:[#allocation3 + $0xa0] sm:$0xff] %v721_v47 }
 0x18e   : > { %744 = vst [vmem:[#allocation3 + $0x78] sm:$0xff] %v608_v49 }
 0x18f   : > { %745 = vst [vmem:[#allocation3 + $0x80] sm:$0xff] %v610_v53  ;;  %v613_v54 = vpop.f32.mrb[12].mxu0 }
 0x190   : > { %v614_v56 = vadd.f32 %v613_v54, %v4440_v42  ;;  %v615_v57 = vpop.f32.mrb[13].mxu0 }
 0x191   : > { %v616_v58 = vadd.f32 %v615_v57, %v4442_v43 }
 0x192   : > { %747 = vst [vmem:[#allocation3 + $0x90] sm:$0xff] %v614_v56 }
 0x193   : > { %748 = vst [vmem:[#allocation3 + $0x98] sm:$0xff] %v616_v58  ;;  %v619_v60 = vpop.f32.mrb[14].mxu0 }
 0x194   : > { %v620_v52 = vadd.f32 %v619_v60, %v4440_v42  ;;  %v621_v62 = vpop.f32.mrb[15].mxu0 }
 0x195   : > { %v622_v63 = vadd.f32 %v621_v62, %v4442_v43 }
 0x196   : > { %750 = vst [vmem:[#allocation3 + $0xa8] sm:$0xff] %v620_v52 }
 0x197   : > { %751 = vst [vmem:[#allocation3 + $0xb0] sm:$0xff] %v622_v63  ;;  %v876_v1 = vpop.f32.mrb[16].mxu0 }
 0x198   : > { %v878_v2 = vpop.f32.mrb[17].mxu0 }
 0x19d   : > { %v947_v3 = vpop.f32.mrb[8].mxu1 }
 0x19e   : > { %v807_v5 = vld [vmem:[%s806_s29] sm:$0xff]  ;;  %v2790_v6 = vpop.f32.mrb[9].mxu1  ;;  %v808_v10 = vld [vmem:[%s806_s29 + $0x8] sm:$0xff]  ;;  %v971_v24 = vadd.f32 %v4465_v21, %v947_v3  ;;  %v809_v31 = vld [vmem:[%s806_s29 + $0x10] sm:$0xff]  ;;  %s2356_s29 = scalar_lea.vmem %s4470_s19, %s2514_s16 [#allocation10]  ;;  %s2542_s16 = smul.u32 4294967240, %s3924_s24 }
 0x19f   : > { %v951_v9 = vadd.f32 %v876_v1, %v807_v5  ;;  %v958_v13 = vadd.f32 %v878_v2, %v808_v10  ;;  %v2494_v47 = vld [vmem:[%s2338_s28 + $0x18] sm:$0xff]  ;;  %v2495_v58 = vld [vmem:[%s2338_s28 + $0x20] sm:$0xff] }
 0x1a1   : > { %v2489_v11 = vmul.f32 -1.442695, %v951_v9  ;;  %v2490_v15 = vmul.f32 -1.442695, %v958_v13  ;;  %v2496_v9 = vld [vmem:[%s2338_s28 + $0x28] sm:$0xff]  ;;  %s2526_s28 = smul.u32 4294967272, %s3924_s24 }
 0x1a3   : > { %3646 = vpow2.f32 %v2489_v11  ;;  %s2368_s23 = scalar_lea.vmem %s4470_s19, %s2526_s28 [#allocation10] }
 0x1a4   : > { %3648 = vpow2.f32 %v2490_v15 }
 0x1ad   : > { %v3647_v42 = vpop.eup %3646 }
 0x1ae   : > { %v955_v43 = vadd.f32 1.0, %v3647_v42  ;;  %v3649_v16 = vpop.eup %3648 }
 0x1af   : > { %v962_v22 = vadd.f32 1.0, %v3649_v16 }
 0x1b0   : > { %3650 = vrcp.f32 %v955_v43 }
 0x1b1   : > { %3652 = vrcp.f32 %v962_v22  ;;  %v2502_v22 = vld [vmem:[%s2346_s7 + $0x30] sm:$0xff] }
 0x1ba   : > { %v3651_v25 = vpop.eup %3650 }
 0x1bb   : > { %v972_v30 = vmul.f32 %v3651_v25, %v971_v24  ;;  %v3653_v36 = vpop.eup %3652 }
 0x1bc   : > { %v975_v37 = vsub.f32 1.0, %v3653_v36  ;;  %v977_v45 = vmul.f32 0.0, %v3653_v36 }
 0x1bd   : > { %v973_v35 = vadd.f32 %v972_v30, %v809_v31 }
 0x1bf   : > { %3654 = vtanh.f32 %v973_v35 }
 0x1c9   : > { %v3655_v40 = vpop.eup %3654 }
 0x1ca   : > { %v976_v41 = vmul.f32 %v3655_v40, %v975_v37  ;;  %v2503_v37 = vld [vmem:[%s2346_s7 + $0x38] sm:$0xff] }
 0x1cc   : > { %v4473_v46 = vadd.f32 %v977_v45, %v976_v41 }
 0x1ce   : > { %981 = vst [vmem:[%s980_s17] sm:$0xff] %v4473_v46  ;;  %1055 = vmatmul.mubr.f32.vlgmr.msra.gmra.mrb[18].mxu0 %v4473_v46  ;;  %2824 = vmatmul.mubr.f32.vlgmr.msra.gmra.mrb[10].mxu1 %v4473_v46  ;;  %s2520_s17 = smul.u32 4294967224, %s3924_s24 }
 0x1cf   : > { %3215 = vmatpush1.bf16.msra.mxu0 %v4262_v18  ;;  %3246 = vmatpush3.bf16.msra.mxu1 %v4286_v34 }
 0x1d0   : > { %3217 = vmatprep.subr.bf16.mxu0 %v4265_v19  ;;  %3247 = vmatprep.subr.bf16.mxu1 %v3942_v33  ;;  %s2364_s13 = scalar_lea.vmem [#allocation3], %s2520_s17  ;;  %s4753_s17 = scalar_lea.hbm %s4838_s5, %s2546_s15 }
 0x1d1   : > { %1228 = vmatprep.mubr.f32.mxu0 %v3941_v0  ;;  %2858 = vmatprep.mubr.msk.f32.mxu1 %vm3943_vm0, %v3941_v0 }
 0x1d3   : > { %3219 = vmatpush1.bf16.msra.mxu0 %v4276_v27  ;;  %3249 = vmatpush3.bf16.msra.mxu1 %v4302_v44 }
 0x1d4   : > { %3221 = vmatprep.subr.bf16.mxu0 %v4279_v28  ;;  %3250 = vmatprep.subr.bf16.mxu1 %v3942_v33 }
 0x1d7   : > { %3223 = vmatpush1.bf16.msra.mxu0 %v4292_v38  ;;  %3252 = vmatpush3.bf16.msra.mxu1 %v4319_v55 }
 0x1d8   : > { %3225 = vmatprep.subr.bf16.mxu0 %v4295_v39  ;;  %3253 = vmatprep.subr.bf16.mxu1 %v3942_v33 }
 0x1db   : > { %3227 = vmatpush1.bf16.msra.mxu0 %v4309_v48  ;;  %3255 = vmatpush3.bf16.msra.mxu1 %v4336_v4 }
 0x1dc   : > { %3229 = vmatprep.subr.bf16.mxu0 %v4312_v50  ;;  %3256 = vmatprep.subr.bf16.mxu1 %v3942_v33 }
 0x1df   : > { %3231 = vmatpush1.bf16.msra.mxu0 %v4326_v59  ;;  %3258 = vmatpush3.bf16.msra.mxu1 %v4353_v14 }
 0x1e0   : > { %3233 = vmatprep.subr.bf16.mxu0 %v4329_v61  ;;  %3259 = vmatprep.subr.bf16.mxu1 %v3942_v33 }
 0x1e3   : > { %3235 = vmatpush1.bf16.msra.mxu0 %v4343_v7  ;;  %3261 = vmatpush3.bf16.msra.mxu1 %v4370_v23 }
 0x1e4   : > { %3237 = vmatprep.subr.bf16.mxu0 %v4346_v8  ;;  %3262 = vmatprep.subr.bf16.mxu1 %v3942_v33 }
 0x1e7   : > { %3239 = vmatpush1.bf16.msra.mxu0 %v4362_v17  ;;  %3264 = vmatpush3.bf16.msra.mxu1 %v4381_v29 }
 0x1e8   : > { %3241 = vmatprep.subr.bf16.mxu0 %v4365_v20  ;;  %3265 = vmatprep.subr.bf16.mxu1 %v3942_v33 }
 0x1eb   : > { %3243 = vmatpush1.bf16.msra.mxu0 %v4377_v26  ;;  %3267 = vmatpush3.bf16.msra.mxu1 %v4390_v32 }
 0x1ec   : > { %3269 = vmatprep.subr.bf16.mxu0 %v4256_v12  ;;  %3300 = vmatprep.subr.bf16.mxu1 %v3942_v33 }
 0x2a1   : > { %v1056_v49 = vpop.f32.mrb[18].mxu0  ;;  %v1127_v51 = vpop.f32.mrb[10].mxu1 }
 0x2a2   : > { %v1131_v53 = vadd.f32 %v2494_v47, %v1056_v49  ;;  %v1058_v54 = vpop.f32.mrb[19].mxu0  ;;  %v2825_v56 = vpop.f32.mrb[11].mxu1  ;;  %v1145_v3 = vadd.f32 %v4465_v21, %v1127_v51 }
 0x2a3   : > { %v1138_v60 = vadd.f32 %v2495_v58, %v1058_v54  ;;  %v2504_v56 = vld [vmem:[%s2346_s7 + $0x40] sm:$0xff]  ;;  %s2534_s7 = smul.u32 4294967256, %s3924_s24 }
 0x2a4   : > { %v2497_v57 = vmul.f32 -1.442695, %v1131_v53 }
 0x2a5   : > { %v2498_v52 = vmul.f32 -1.442695, %v1138_v60  ;;  %s2376_s18 = scalar_lea.vmem %s4470_s19, %s2534_s7 [#allocation10]  ;;  %s3944_s7 = smov [#allocation10]  }
 0x2a6   : > { %3656 = vpow2.f32 %v2497_v57 }
 0x2a7   : > { %3658 = vpow2.f32 %v2498_v52 }
 0x2b0   : > { %v3657_v62 = vpop.eup %3656 }
 0x2b1   : > { %v1135_v63 = vadd.f32 1.0, %v3657_v62  ;;  %v3659_v1 = vpop.eup %3658 }
 0x2b2   : > { %v1142_v2 = vadd.f32 1.0, %v3659_v1 }
 0x2b3   : > { %3660 = vrcp.f32 %v1135_v63 }
 0x2b4   : > { %3662 = vrcp.f32 %v1142_v2  ;;  %v2509_v2 = vld [vmem:[%s2353_s11 + $0x48] sm:$0xff] }
 0x2bd   : > { %v3661_v5 = vpop.eup %3660 }
 0x2be   : > { %v1146_v6 = vmul.f32 %v3661_v5, %v1145_v3  ;;  %v3663_v11 = vpop.eup %3662 }
 0x2bf   : > { %v1149_v13 = vsub.f32 1.0, %v3663_v11  ;;  %v1151_v43 = vmul.f32 %v3663_v11, %v4473_v46 }
 0x2c0   : > { %v1147_v10 = vadd.f32 %v2496_v9, %v1146_v6 }
 0x2c2   : > { %3664 = vtanh.f32 %v1147_v10 }
 0x2cc   : > { %v3665_v15 = vpop.eup %3664 }
 0x2cd   : > { %v1150_v42 = vmul.f32 %v3665_v15, %v1149_v13  ;;  %v2510_v13 = vld [vmem:[%s2353_s11 + $0x50] sm:$0xff] }
 0x2cf   : > { %v4518_v16 = vadd.f32 %v1151_v43, %v1150_v42 }
 0x2d1   : > { %2500 = vst [vmem:[%s2342_s27 + $0x8] sm:$0xff] %v4518_v16  ;;  %1229 = vmatmul.mubr.f32.vlgmr.msra.gmra.mrb[20].mxu0 %v4518_v16  ;;  %2859 = vmatmul.mubr.f32.vlgmr.msra.gmra.mrb[12].mxu1 %v4518_v16  ;;  %s2528_s27 = smul.u32 4294967176, %s3924_s24 }
 0x2d2   : > { %3271 = vmatpush1.bf16.msra.mxu0 %v4262_v18  ;;  %3302 = vmatpush3.bf16.msra.mxu1 %v4286_v34 }
 0x2d3   : > { %3273 = vmatprep.subr.bf16.mxu0 %v4265_v19  ;;  %3303 = vmatprep.subr.bf16.mxu1 %v3942_v33  ;;  %s2372_s9 = scalar_lea.vmem [#allocation3], %s2528_s27  ;;  %s2204_s27 = scalar_lea.sflag [#allocation6], %s4187_s1 }
 0x2d4   : > { %1401 = vmatprep.mubr.f32.mxu0 %v3941_v0  ;;  %2893 = vmatprep.mubr.msk.f32.mxu1 %vm3943_vm0, %v3941_v0 }
 0x2d6   : > { %3275 = vmatpush1.bf16.msra.mxu0 %v4276_v27  ;;  %3305 = vmatpush3.bf16.msra.mxu1 %v4302_v44 }
 0x2d7   : > { %3277 = vmatprep.subr.bf16.mxu0 %v4279_v28  ;;  %3306 = vmatprep.subr.bf16.mxu1 %v3942_v33 }
 0x2da   : > { %3279 = vmatpush1.bf16.msra.mxu0 %v4292_v38  ;;  %3308 = vmatpush3.bf16.msra.mxu1 %v4319_v55 }
 0x2db   : > { %3281 = vmatprep.subr.bf16.mxu0 %v4295_v39  ;;  %3309 = vmatprep.subr.bf16.mxu1 %v3942_v33 }
 0x2de   : > { %3283 = vmatpush1.bf16.msra.mxu0 %v4309_v48  ;;  %3311 = vmatpush3.bf16.msra.mxu1 %v4336_v4 }
 0x2df   : > { %3285 = vmatprep.subr.bf16.mxu0 %v4312_v50  ;;  %3312 = vmatprep.subr.bf16.mxu1 %v3942_v33 }
 0x2e2   : > { %3287 = vmatpush1.bf16.msra.mxu0 %v4326_v59  ;;  %3314 = vmatpush3.bf16.msra.mxu1 %v4353_v14 }
 0x2e3   : > { %3289 = vmatprep.subr.bf16.mxu0 %v4329_v61  ;;  %3315 = vmatprep.subr.bf16.mxu1 %v3942_v33 }
 0x2e6   : > { %3291 = vmatpush1.bf16.msra.mxu0 %v4343_v7  ;;  %3317 = vmatpush3.bf16.msra.mxu1 %v4370_v23 }
 0x2e7   : > { %3293 = vmatprep.subr.bf16.mxu0 %v4346_v8  ;;  %3318 = vmatprep.subr.bf16.mxu1 %v3942_v33 }
 0x2ea   : > { %3295 = vmatpush1.bf16.msra.mxu0 %v4362_v17  ;;  %3320 = vmatpush3.bf16.msra.mxu1 %v4381_v29 }
 0x2eb   : > { %3297 = vmatprep.subr.bf16.mxu0 %v4365_v20  ;;  %3321 = vmatprep.subr.bf16.mxu1 %v3942_v33 }
 0x2ee   : > { %3299 = vmatpush1.bf16.msra.mxu0 %v4377_v26  ;;  %3323 = vmatpush3.bf16.msra.mxu1 %v4390_v32 }
 0x2ef   : > { %3325 = vmatprep.subr.bf16.mxu0 %v4256_v12  ;;  %3356 = vmatprep.subr.bf16.mxu1 %v3942_v33 }
 0x3a4   : > { %v1230_v24 = vpop.f32.mrb[20].mxu0  ;;  %v1301_v25 = vpop.f32.mrb[12].mxu1 }
 0x3a5   : > { %v1305_v30 = vadd.f32 %v2502_v22, %v1230_v24  ;;  %v1232_v31 = vpop.f32.mrb[21].mxu0  ;;  %v2860_v35 = vpop.f32.mrb[13].mxu1  ;;  %v1319_v51 = vadd.f32 %v4465_v21, %v1301_v25 }
 0x3a6   : > { %v1312_v40 = vadd.f32 %v2503_v37, %v1232_v31  ;;  %v2511_v35 = vld [vmem:[%s2353_s11 + $0x58] sm:$0xff] }
 0x3a7   : > { %v2505_v36 = vmul.f32 -1.442695, %v1305_v30 }
 0x3a8   : > { %v2506_v41 = vmul.f32 -1.442695, %v1312_v40 }
 0x3a9   : > { %3666 = vpow2.f32 %v2505_v36 }
 0x3aa   : > { %3668 = vpow2.f32 %v2506_v41 }
 0x3b3   : > { %v3667_v45 = vpop.eup %3666 }
 0x3b4   : > { %v1309_v46 = vadd.f32 1.0, %v3667_v45  ;;  %v3669_v47 = vpop.eup %3668 }
 0x3b5   : > { %v1316_v49 = vadd.f32 1.0, %v3669_v47 }
 0x3b6   : > { %3670 = vrcp.f32 %v1309_v46 }
 0x3b7   : > { %3672 = vrcp.f32 %v1316_v49  ;;  %v1507_v49 = vld [vmem:[%s1506_s20] sm:$0xff] }
 0x3c0   : > { %v3671_v53 = vpop.eup %3670 }
 0x3c1   : > { %v1320_v54 = vmul.f32 %v3671_v53, %v1319_v51  ;;  %v3673_v58 = vpop.eup %3672 }
 0x3c2   : > { %v1323_v60 = vsub.f32 1.0, %v3673_v58  ;;  %v1325_v63 = vmul.f32 %v3673_v58, %v4518_v16 }
 0x3c3   : > { %v1321_v57 = vadd.f32 %v2504_v56, %v1320_v54 }
 0x3c5   : > { %3674 = vtanh.f32 %v1321_v57 }
 0x3cf   : > { %v3675_v52 = vpop.eup %3674 }
 0x3d0   : > { %v1324_v62 = vmul.f32 %v3675_v52, %v1323_v60  ;;  %v1508_v60 = vld [vmem:[%s1506_s20 + $0x8] sm:$0xff] }
 0x3d2   : > { %v4565_v1 = vadd.f32 %v1325_v63, %v1324_v62 }
 0x3d4   : > { %2508 = vst [vmem:[%s2350_s14 + $0x10] sm:$0xff] %v4565_v1  ;;  %1402 = vmatmul.mubr.f32.vlgmr.msra.gmra.mrb[22].mxu0 %v4565_v1  ;;  %2894 = vmatmul.mubr.f32.vlgmr.msra.gmra.mrb[14].mxu1 %v4565_v1  ;;  %s2536_s14 = smul.u32 4294967128, %s3924_s24 }
 0x3d5   : > { %3327 = vmatpush1.bf16.msra.mxu0 %v4262_v18  ;;  %3358 = vmatpush3.bf16.msra.mxu1 %v4286_v34 }
 0x3d6   : > { %3329 = vmatprep.subr.bf16.mxu0 %v4265_v19  ;;  %3359 = vmatprep.subr.bf16.mxu1 %v3942_v33  ;;  %s2380_s11 = scalar_lea.vmem [#allocation3], %s2536_s14 }
 0x3d7   : > { %1574 = vmatprep.mubr.f32.mxu0 %v3941_v0  ;;  %2928 = vmatprep.mubr.msk.f32.mxu1 %vm3943_vm0, %v3941_v0 }
 0x3d9   : > { %3331 = vmatpush1.bf16.msra.mxu0 %v4276_v27  ;;  %3361 = vmatpush3.bf16.msra.mxu1 %v4302_v44 }
 0x3da   : > { %3333 = vmatprep.subr.bf16.mxu0 %v4279_v28  ;;  %3362 = vmatprep.subr.bf16.mxu1 %v3942_v33 }
 0x3dd   : > { %3335 = vmatpush1.bf16.msra.mxu0 %v4292_v38  ;;  %3364 = vmatpush3.bf16.msra.mxu1 %v4319_v55 }
 0x3de   : > { %3337 = vmatprep.subr.bf16.mxu0 %v4295_v39  ;;  %3365 = vmatprep.subr.bf16.mxu1 %v3942_v33 }
 0x3e1   : > { %3339 = vmatpush1.bf16.msra.mxu0 %v4309_v48  ;;  %3367 = vmatpush3.bf16.msra.mxu1 %v4336_v4 }
 0x3e2   : > { %3341 = vmatprep.subr.bf16.mxu0 %v4312_v50  ;;  %3368 = vmatprep.subr.bf16.mxu1 %v3942_v33 }
 0x3e5   : > { %3343 = vmatpush1.bf16.msra.mxu0 %v4326_v59  ;;  %3370 = vmatpush3.bf16.msra.mxu1 %v4353_v14 }
 0x3e6   : > { %3345 = vmatprep.subr.bf16.mxu0 %v4329_v61  ;;  %3371 = vmatprep.subr.bf16.mxu1 %v3942_v33 }
 0x3e9   : > { %3347 = vmatpush1.bf16.msra.mxu0 %v4343_v7  ;;  %3373 = vmatpush3.bf16.msra.mxu1 %v4370_v23 }
 0x3ea   : > { %3349 = vmatprep.subr.bf16.mxu0 %v4346_v8  ;;  %3374 = vmatprep.subr.bf16.mxu1 %v3942_v33 }
 0x3ed   : > { %3351 = vmatpush1.bf16.msra.mxu0 %v4362_v17  ;;  %3376 = vmatpush3.bf16.msra.mxu1 %v4381_v29 }
 0x3ee   : > { %3353 = vmatprep.subr.bf16.mxu0 %v4365_v20  ;;  %3377 = vmatprep.subr.bf16.mxu1 %v3942_v33 }
 0x3f1   : > { %3355 = vmatpush1.bf16.msra.mxu0 %v4377_v26  ;;  %3379 = vmatpush3.bf16.msra.mxu1 %v4390_v32 }
 0x3f2   : > { %3381 = vmatprep.subr.bf16.mxu0 %v4256_v12  ;;  %3412 = vmatprep.subr.bf16.mxu1 %v3942_v33 }
 0x4a7   : > { %v1403_v3 = vpop.f32.mrb[22].mxu0  ;;  %v1474_v5 = vpop.f32.mrb[14].mxu1 }
 0x4a8   : > { %v1478_v6 = vadd.f32 %v2509_v2, %v1403_v3  ;;  %v1405_v9 = vpop.f32.mrb[23].mxu0  ;;  %v2895_v10 = vpop.f32.mrb[15].mxu1  ;;  %v1492_v25 = vadd.f32 %v4465_v21, %v1474_v5 }
 0x4a9   : > { %v1485_v15 = vadd.f32 %v2510_v13, %v1405_v9  ;;  %v1509_v10 = vld [vmem:[%s1506_s20 + $0x10] sm:$0xff]  ;;  %s2384_s20 = scalar_lea.vmem %s4470_s19, %s2542_s16 [#allocation10] }
 0x4aa   : > { %v2512_v11 = vmul.f32 -1.442695, %v1478_v6 }
 0x4ab   : > { %v2513_v42 = vmul.f32 -1.442695, %v1485_v15 }
 0x4ac   : > { %3676 = vpow2.f32 %v2512_v11 }
 0x4ad   : > { %3678 = vpow2.f32 %v2513_v42 }
 0x4b6   : > { %v3677_v43 = vpop.eup %3676 }
 0x4b7   : > { %v1482_v16 = vadd.f32 1.0, %v3677_v43  ;;  %v3679_v22 = vpop.eup %3678 }
 0x4b8   : > { %v1489_v24 = vadd.f32 1.0, %v3679_v22 }
 0x4b9   : > { %3680 = vrcp.f32 %v1482_v16 }
 0x4ba   : > { %3682 = vrcp.f32 %v1489_v24  ;;  %v2521_v24 = vld [vmem:[%s2364_s13 + $0x78] sm:$0xff] }
 0x4c3   : > { %v3681_v30 = vpop.eup %3680 }
 0x4c4   : > { %v1493_v31 = vmul.f32 %v3681_v30, %v1492_v25  ;;  %v3683_v37 = vpop.eup %3682 }
 0x4c5   : > { %v1496_v40 = vsub.f32 1.0, %v3683_v37  ;;  %v1498_v46 = vmul.f32 %v3683_v37, %v4565_v1 }
 0x4c6   : > { %v1494_v36 = vadd.f32 %v2511_v35, %v1493_v31 }
 0x4c8   : > { %3684 = vtanh.f32 %v1494_v36 }
 0x4d2   : > { %v3685_v41 = vpop.eup %3684 }
 0x4d3   : > { %v1497_v45 = vmul.f32 %v3685_v41, %v1496_v40  ;;  %v2522_v40 = vld [vmem:[%s2364_s13 + $0x80] sm:$0xff] }
 0x4d5   : > { %v4611_v47 = vadd.f32 %v1498_v46, %v1497_v45 }
 0x4d7   : > { %2515 = vst [vmem:[%s2356_s29 + $0x18] sm:$0xff] %v4611_v47  ;;  %1575 = vmatmul.mubr.f32.vlgmr.msra.gmra.mrb[24].mxu0 %v4611_v47  ;;  %2929 = vmatmul.mubr.f32.vlgmr.msra.gmra.mrb[16].mxu1 %v4611_v47  ;;  %s2486_s29 = sshll.u32 %s4187_s1, 3 }
 0x4d8   : > { %3383 = vmatpush1.bf16.msra.mxu0 %v4262_v18  ;;  %3414 = vmatpush3.bf16.msra.mxu1 %v4286_v34 }
 0x4d9   : > { %3385 = vmatprep.subr.bf16.mxu0 %v4265_v19  ;;  %3415 = vmatprep.subr.bf16.mxu1 %v3942_v33 }
 0x4da   : > { %1748 = vmatprep.mubr.f32.mxu0 %v3941_v0  ;;  %2963 = vmatprep.mubr.msk.f32.mxu1 %vm3943_vm0, %v3941_v0 }
 0x4dc   : > { %3387 = vmatpush1.bf16.msra.mxu0 %v4276_v27  ;;  %3417 = vmatpush3.bf16.msra.mxu1 %v4302_v44 }
 0x4dd   : > { %3389 = vmatprep.subr.bf16.mxu0 %v4279_v28  ;;  %3418 = vmatprep.subr.bf16.mxu1 %v3942_v33 }
 0x4e0   : > { %3391 = vmatpush1.bf16.msra.mxu0 %v4292_v38  ;;  %3420 = vmatpush3.bf16.msra.mxu1 %v4319_v55 }
 0x4e1   : > { %3393 = vmatprep.subr.bf16.mxu0 %v4295_v39  ;;  %3421 = vmatprep.subr.bf16.mxu1 %v3942_v33 }
 0x4e4   : > { %3395 = vmatpush1.bf16.msra.mxu0 %v4309_v48  ;;  %3423 = vmatpush3.bf16.msra.mxu1 %v4336_v4 }
 0x4e5   : > { %3397 = vmatprep.subr.bf16.mxu0 %v4312_v50  ;;  %3424 = vmatprep.subr.bf16.mxu1 %v3942_v33 }
 0x4e8   : > { %3399 = vmatpush1.bf16.msra.mxu0 %v4326_v59  ;;  %3426 = vmatpush3.bf16.msra.mxu1 %v4353_v14 }
 0x4e9   : > { %3401 = vmatprep.subr.bf16.mxu0 %v4329_v61  ;;  %3427 = vmatprep.subr.bf16.mxu1 %v3942_v33 }
 0x4ec   : > { %3403 = vmatpush1.bf16.msra.mxu0 %v4343_v7  ;;  %3429 = vmatpush3.bf16.msra.mxu1 %v4370_v23 }
 0x4ed   : > { %3405 = vmatprep.subr.bf16.mxu0 %v4346_v8  ;;  %3430 = vmatprep.subr.bf16.mxu1 %v3942_v33 }
 0x4f0   : > { %3407 = vmatpush1.bf16.msra.mxu0 %v4362_v17  ;;  %3432 = vmatpush3.bf16.msra.mxu1 %v4381_v29 }
 0x4f1   : > { %3409 = vmatprep.subr.bf16.mxu0 %v4365_v20  ;;  %3433 = vmatprep.subr.bf16.mxu1 %v3942_v33 }
 0x4f4   : > { %3411 = vmatpush1.bf16.msra.mxu0 %v4377_v26  ;;  %3435 = vmatpush3.bf16.msra.mxu1 %v4390_v32 }
 0x4f5   : > { %3437 = vmatprep.subr.bf16.mxu0 %v4256_v12  ;;  %3468 = vmatprep.subr.bf16.mxu1 %v3942_v33 }
 0x5aa   : > { %v1576_v51 = vpop.f32.mrb[24].mxu0  ;;  %v1647_v53 = vpop.f32.mrb[16].mxu1 }
 0x5ab   : > { %v1651_v54 = vadd.f32 %v1576_v51, %v1507_v49  ;;  %v1578_v56 = vpop.f32.mrb[25].mxu0  ;;  %v2930_v57 = vpop.f32.mrb[17].mxu1  ;;  %v1665_v5 = vadd.f32 %v4465_v21, %v1647_v53 }
 0x5ac   : > { %v1658_v52 = vadd.f32 %v1578_v56, %v1508_v60  ;;  %v2523_v56 = vld [vmem:[%s2364_s13 + $0x88] sm:$0xff]  ;;  %s415_s13 = scalar_lea.vmem [#allocation11], %s2486_s29 }
 0x5ad   : > { %v2517_v58 = vmul.f32 -1.442695, %v1651_v54  ;;  %s2244_s24 = sshll.u32 %s415_s13, 4  ;;  %s4762_s24 = int_to_ptr.vmem [resolvable:$true] %s2244_s24 }
 0x5ae   : > { %v2518_v62 = vmul.f32 -1.442695, %v1658_v52 }
 0x5af   : > { %3686 = vpow2.f32 %v2517_v58 }
 0x5b0   : > { %3688 = vpow2.f32 %v2518_v62 }
 0x5b9   : > { %v3687_v63 = vpop.eup %3686 }
 0x5ba   : > { %v1655_v1 = vadd.f32 1.0, %v3687_v63  ;;  %v3689_v2 = vpop.eup %3688 }
 0x5bb   : > { %v1662_v3 = vadd.f32 1.0, %v3689_v2  ;;  %v2537_v2 = vld [vmem:[%s2380_s11 + $0xa8] sm:$0xff] }
 0x5bc   : > { %3690 = vrcp.f32 %v1655_v1 }
 0x5bd   : > { %3692 = vrcp.f32 %v1662_v3 }
 0x5c6   : > { %v3691_v6 = vpop.eup %3690 }
 0x5c7   : > { %v1666_v9 = vmul.f32 %v3691_v6, %v1665_v5  ;;  %v3693_v13 = vpop.eup %3692 }
 0x5c8   : > { %v1669_v15 = vsub.f32 1.0, %v3693_v13  ;;  %v1671_v16 = vmul.f32 %v3693_v13, %v4611_v47  ;;  %v2538_v13 = vld [vmem:[%s2380_s11 + $0xb0] sm:$0xff] }
 0x5c9   : > { %v1667_v11 = vadd.f32 %v1666_v9, %v1509_v10 }
 0x5cb   : > { %3694 = vtanh.f32 %v1667_v11 }
 0x5d5   : > { %v3695_v42 = vpop.eup %3694 }
 0x5d6   : > { %v1670_v43 = vmul.f32 %v3695_v42, %v1669_v15 }
 0x5d8   : > { %v4655_v22 = vadd.f32 %v1671_v16, %v1670_v43 }
 0x5da   : > { %1675 = vst [vmem:[%s1674_s26] sm:$0xff] %v4655_v22  ;;  %1749 = vmatmul.mubr.f32.vlgmr.msra.gmra.mrb[26].mxu0 %v4655_v22  ;;  %2964 = vmatmul.mubr.f32.vlgmr.msra.gmra.mrb[18].mxu1 %v4655_v22 }
 0x5db   : > { %3439 = vmatpush1.bf16.msra.mxu0 %v4262_v18  ;;  %3470 = vmatpush3.bf16.msra.mxu1 %v4286_v34 }
 0x5dc   : > { %3441 = vmatprep.subr.bf16.mxu0 %v4265_v19  ;;  %3471 = vmatprep.subr.bf16.mxu1 %v3942_v33 }
 0x5dd   : > { %1922 = vmatprep.mubr.f32.mxu0 %v3941_v0  ;;  %2998 = vmatprep.mubr.msk.f32.mxu1 %vm3943_vm0, %v3941_v0 }
 0x5df   : > { %3443 = vmatpush1.bf16.msra.mxu0 %v4276_v27  ;;  %3473 = vmatpush3.bf16.msra.mxu1 %v4302_v44 }
 0x5e0   : > { %3445 = vmatprep.subr.bf16.mxu0 %v4279_v28  ;;  %3474 = vmatprep.subr.bf16.mxu1 %v3942_v33 }
 0x5e3   : > { %3447 = vmatpush1.bf16.msra.mxu0 %v4292_v38  ;;  %3476 = vmatpush3.bf16.msra.mxu1 %v4319_v55 }
 0x5e4   : > { %3449 = vmatprep.subr.bf16.mxu0 %v4295_v39  ;;  %3477 = vmatprep.subr.bf16.mxu1 %v3942_v33 }
 0x5e7   : > { %3451 = vmatpush1.bf16.msra.mxu0 %v4309_v48  ;;  %3479 = vmatpush3.bf16.msra.mxu1 %v4336_v4 }
 0x5e8   : > { %3453 = vmatprep.subr.bf16.mxu0 %v4312_v50  ;;  %3480 = vmatprep.subr.bf16.mxu1 %v3942_v33 }
 0x5eb   : > { %3455 = vmatpush1.bf16.msra.mxu0 %v4326_v59  ;;  %3482 = vmatpush3.bf16.msra.mxu1 %v4353_v14 }
 0x5ec   : > { %3457 = vmatprep.subr.bf16.mxu0 %v4329_v61  ;;  %3483 = vmatprep.subr.bf16.mxu1 %v3942_v33 }
 0x5ef   : > { %3459 = vmatpush1.bf16.msra.mxu0 %v4343_v7  ;;  %3485 = vmatpush3.bf16.msra.mxu1 %v4370_v23 }
 0x5f0   : > { %3461 = vmatprep.subr.bf16.mxu0 %v4346_v8  ;;  %3486 = vmatprep.subr.bf16.mxu1 %v3942_v33 }
 0x5f3   : > { %3463 = vmatpush1.bf16.msra.mxu0 %v4362_v17  ;;  %3488 = vmatpush3.bf16.msra.mxu1 %v4381_v29 }
 0x5f4   : > { %3465 = vmatprep.subr.bf16.mxu0 %v4365_v20  ;;  %3489 = vmatprep.subr.bf16.mxu1 %v3942_v33 }
 0x5f7   : > { %3467 = vmatpush1.bf16.msra.mxu0 %v4377_v26  ;;  %3491 = vmatpush3.bf16.msra.mxu1 %v4390_v32 }
 0x5f8   : > { %3493 = vmatprep.subr.bf16.mxu0 %v4256_v12  ;;  %3524 = vmatprep.subr.bf16.mxu1 %v3942_v33 }
 0x6ad   : > { %v1750_v25 = vpop.f32.mrb[26].mxu0  ;;  %v1821_v30 = vpop.f32.mrb[18].mxu1 }
 0x6ae   : > { %v1825_v31 = vadd.f32 %v2521_v24, %v1750_v25  ;;  %v1752_v35 = vpop.f32.mrb[27].mxu0  ;;  %v2965_v36 = vpop.f32.mrb[19].mxu1  ;;  %v1839_v51 = vadd.f32 %v4465_v21, %v1821_v30 }
 0x6af   : > { %v1832_v41 = vadd.f32 %v2522_v40, %v1752_v35  ;;  %v2539_v35 = vld [vmem:[%s2380_s11 + $0xb8] sm:$0xff] }
 0x6b0   : > { %v2524_v37 = vmul.f32 -1.442695, %v1825_v31 }
 0x6b1   : > { %v2525_v45 = vmul.f32 -1.442695, %v1832_v41 }
 0x6b2   : > { %3696 = vpow2.f32 %v2524_v37 }
 0x6b3   : > { %3698 = vpow2.f32 %v2525_v45 }
 0x6bc   : > { %v3697_v46 = vpop.eup %3696 }
 0x6bd   : > { %v1829_v47 = vadd.f32 1.0, %v3697_v46  ;;  %v3699_v12 = vpop.eup %3698 }
 0x6be   : > { %v1836_v49 = vadd.f32 1.0, %v3699_v12 }
 0x6bf   : > { %3700 = vrcp.f32 %v1829_v47 }
 0x6c0   : > { %3702 = vrcp.f32 %v1836_v49 }
 0x6c9   : > { %v3701_v53 = vpop.eup %3700 }
 0x6ca   : > { %v1840_v54 = vmul.f32 %v3701_v53, %v1839_v51  ;;  %v3703_v58 = vpop.eup %3702 }
 0x6cb   : > { %v1843_v60 = vsub.f32 1.0, %v3703_v58  ;;  %v1845_v63 = vmul.f32 %v3703_v58, %v4655_v22 }
 0x6cc   : > { %v1841_v57 = vadd.f32 %v2523_v56, %v1840_v54 }
 0x6ce   : > { %3704 = vtanh.f32 %v1841_v57 }
 0x6d8   : > { %v3705_v52 = vpop.eup %3704 }
 0x6d9   : > { %v1844_v62 = vmul.f32 %v3705_v52, %v1843_v60 }
 0x6db   : > { %v4700_v1 = vadd.f32 %v1845_v63, %v1844_v62 }
 0x6dd   : > { %2527 = vst [vmem:[%s2368_s23 + $0x28] sm:$0xff] %v4700_v1  ;;  %1923 = vmatmul.mubr.f32.vlgmr.msra.gmra.mrb[28].mxu0 %v4700_v1  ;;  %2999 = vmatmul.mubr.f32.vlgmr.msra.gmra.mrb[20].mxu1 %v4700_v1  ;;  %s4760_s23 = scalar_lea.hbm %s4839_s6, %s2546_s15 }
 0x6de   : > { %3495 = vmatpush1.bf16.msra.mxu0 %v4262_v18  ;;  %3526 = vmatpush3.bf16.msra.mxu1 %v4286_v34 }
 0x6df   : > { %3497 = vmatprep.subr.bf16.mxu0 %v4265_v19  ;;  %3527 = vmatprep.subr.bf16.mxu1 %v3942_v33 }
 0x6e0   : > { %2096 = vmatprep.mubr.f32.mxu0 %v3941_v0  ;;  %3033 = vmatprep.mubr.msk.f32.mxu1 %vm3943_vm0, %v3941_v0  ;;  %v2529_v0 = vld [vmem:[%s2372_s9 + $0x90] sm:$0xff] }
 0x6e2   : > { %3499 = vmatpush1.bf16.msra.mxu0 %v4276_v27  ;;  %3529 = vmatpush3.bf16.msra.mxu1 %v4302_v44 }
 0x6e3   : > { %3501 = vmatprep.subr.bf16.mxu0 %v4279_v28  ;;  %3530 = vmatprep.subr.bf16.mxu1 %v3942_v33 }
 0x6e6   : > { %3503 = vmatpush1.bf16.msra.mxu0 %v4292_v38  ;;  %3532 = vmatpush3.bf16.msra.mxu1 %v4319_v55 }
 0x6e7   : > { %3505 = vmatprep.subr.bf16.mxu0 %v4295_v39  ;;  %3533 = vmatprep.subr.bf16.mxu1 %v3942_v33  ;;  %v2530_v39 = vld [vmem:[%s2372_s9 + $0x98] sm:$0xff] }
 0x6ea   : > { %3507 = vmatpush1.bf16.msra.mxu0 %v4309_v48  ;;  %3535 = vmatpush3.bf16.msra.mxu1 %v4336_v4 }
 0x6eb   : > { %3509 = vmatprep.subr.bf16.mxu0 %v4312_v50  ;;  %3536 = vmatprep.subr.bf16.mxu1 %v3942_v33 }
 0x6ee   : > { %3511 = vmatpush1.bf16.msra.mxu0 %v4326_v59  ;;  %3538 = vmatpush3.bf16.msra.mxu1 %v4353_v14 }
 0x6ef   : > { %3513 = vmatprep.subr.bf16.mxu0 %v4329_v61  ;;  %3539 = vmatprep.subr.bf16.mxu1 %v3942_v33 }
 0x6f2   : > { %3515 = vmatpush1.bf16.msra.mxu0 %v4343_v7  ;;  %3541 = vmatpush3.bf16.msra.mxu1 %v4370_v23 }
 0x6f3   : > { %3517 = vmatprep.subr.bf16.mxu0 %v4346_v8  ;;  %3542 = vmatprep.subr.bf16.mxu1 %v3942_v33  ;;  %v2531_v8 = vld [vmem:[%s2372_s9 + $0xa0] sm:$0xff]  ;;  %s3814_s9 = scalar_lea.vmem %s4755_s8, 1024 }
 0x6f4   : > { %p3815_p2 = scmp.ne.s32.totalorder %s4755_s8, %s3814_s9 }
 0x6f6   : > { %3519 = vmatpush1.bf16.msra.mxu0 %v4362_v17  ;;  %3544 = vmatpush3.bf16.msra.mxu1 %v4381_v29  ;;  %p3816_p11 = pnand %p3815_p2, %p4881_p13 }
 0x6f7   : > { %3521 = vmatprep.subr.bf16.mxu0 %v4365_v20  ;;  %3545 = vmatprep.subr.bf16.mxu1 %v3942_v33 }
 0x6f8   : > { %p3817_p1 = pneg %p3816_p11 }
 0x6fa   : > { %3523 = vmatpush1.bf16.msra.mxu0 %v4377_v26  ;;  %3547 = vmatpush3.bf16.msra.mxu1 %v4390_v32 }
 0x7b0   : > { %v1924_v18 = vpop.f32.mrb[28].mxu0  ;;  %v1995_v19 = vpop.f32.mrb[20].mxu1 }
 0x7b1   : > { %v1999_v27 = vadd.f32 %v2529_v0, %v1924_v18  ;;  %v1926_v28 = vpop.f32.mrb[29].mxu0  ;;  %v3000_v34 = vpop.f32.mrb[21].mxu1  ;;  %v2013_v61 = vadd.f32 %v4465_v21, %v1995_v19 }
 0x7b2   : > { %v2006_v44 = vadd.f32 %v2530_v39, %v1926_v28 }
 0x7b3   : > { %v2532_v38 = vmul.f32 -1.442695, %v1999_v27 }
 0x7b4   : > { %v2533_v48 = vmul.f32 -1.442695, %v2006_v44 }
 0x7b5   : > { %3706 = vpow2.f32 %v2532_v38 }
 0x7b6   : > { %3708 = vpow2.f32 %v2533_v48 }
 0x7bf   : > { %v3707_v33 = vpop.eup %3706 }
 0x7c0   : > { %v2003_v50 = vadd.f32 1.0, %v3707_v33  ;;  %v3709_v55 = vpop.eup %3708 }
 0x7c1   : > { %v2010_v59 = vadd.f32 1.0, %v3709_v55 }
 0x7c2   : > { %3710 = vrcp.f32 %v2003_v50 }
 0x7c3   : > { %3712 = vrcp.f32 %v2010_v59 }
 0x7cc   : > { %v3711_v4 = vpop.eup %3710 }
 0x7cd   : > { %v2014_v7 = vmul.f32 %v3711_v4, %v2013_v61  ;;  %v3713_v17 = vpop.eup %3712 }
 0x7ce   : > { %v2017_v20 = vsub.f32 1.0, %v3713_v17  ;;  %v2019_v29 = vmul.f32 %v3713_v17, %v4700_v1 }
 0x7cf   : > { %v2015_v14 = vadd.f32 %v2531_v8, %v2014_v7 }
 0x7d1   : > { %3714 = vtanh.f32 %v2015_v14 }
 0x7db   : > { %v3715_v23 = vpop.eup %3714 }
 0x7dc   : > { %v2018_v26 = vmul.f32 %v3715_v23, %v2017_v20 }
 0x7de   : > { %v2020_v32 = vadd.f32 %v2019_v29, %v2018_v26 }
 0x7e0   : > { %2535 = vst [vmem:[%s2376_s18 + $0x30] sm:$0xff] %v2020_v32  ;;  %2097 = vmatmul.mubr.f32.vlgmr.msra.gmra.mrb[30].mxu0 %v2020_v32  ;;  %3034 = vmatmul.mubr.f32.vlgmr.msra.gmra.mrb[22].mxu1 %v2020_v32  ;;  %s3818_s18 = sshll.u32 %s3944_s7, 4  ;;  %s3819_s18 = int_to_ptr.vmem [resolvable:$false] %s3818_s18 }
 0x7e1   : > { %s3820_s14 = scalar_lea.vmem %s3819_s18, 2048  ;;  %p3821_p8 = scmp.lt.s32.totalorder %s4755_s8, %s3819_s18 }
 0x7e2   : > { %p3822_p4 = scmp.lt.s32.totalorder %s3820_s14, %s3814_s9 }
 0x7e4   : > { %p3823_p9 = por %p3822_p4, %p3821_p8 }
 0x7e6   : > { %p3824_p3 = pnand %p3823_p9, %p3817_p1 }
 0x8b3   : > { %v2098_v3 = vpop.f32.mrb[30].mxu0  ;;  %v2169_v5 = vpop.f32.mrb[22].mxu1 }
 0x8b4   : > { %v2173_v6 = vadd.f32 %v2537_v2, %v2098_v3  ;;  %v2100_v9 = vpop.f32.mrb[31].mxu0  ;;  %v3035_v10 = vpop.f32.mrb[23].mxu1  ;;  %v2187_v25 = vadd.f32 %v4465_v21, %v2169_v5 }
 0x8b5   : > { %v2180_v15 = vadd.f32 %v2538_v13, %v2100_v9 }
 0x8b6   : > { %v2540_v11 = vmul.f32 -1.442695, %v2173_v6 }
 0x8b7   : > { %v2541_v42 = vmul.f32 -1.442695, %v2180_v15 }
 0x8b8   : > { %3716 = vpow2.f32 %v2540_v11 }
 0x8b9   : > { %3718 = vpow2.f32 %v2541_v42 }
 0x8c2   : > { %v3717_v43 = vpop.eup %3716 }
 0x8c3   : > { %v2177_v16 = vadd.f32 1.0, %v3717_v43  ;;  %v3719_v22 = vpop.eup %3718 }
 0x8c4   : > { %v2184_v24 = vadd.f32 1.0, %v3719_v22 }
 0x8c5   : > { %3720 = vrcp.f32 %v2177_v16 }
 0x8c6   : > { %3722 = vrcp.f32 %v2184_v24 }
 0x8cf   : > { %v3721_v30 = vpop.eup %3720 }
 0x8d0   : > { %v2188_v31 = vmul.f32 %v3721_v30, %v2187_v25  ;;  %v3723_v37 = vpop.eup %3722 }
 0x8d1   : > { %v2191_v40 = vsub.f32 1.0, %v3723_v37  ;;  %v2193_v45 = vmul.f32 %v3723_v37, %v2020_v32 }
 0x8d2   : > { %v2189_v36 = vadd.f32 %v2539_v35, %v2188_v31 }
 0x8d4   : > { %3724 = vtanh.f32 %v2189_v36 }
 0x8de   : > { %v3725_v41 = vpop.eup %3724 }
 0x8df   : > { %v2192_v21 = vmul.f32 %v3725_v41, %v2191_v40 }
 0x8e1   : > { %v2194_v46 = vadd.f32 %v2193_v45, %v2192_v21 }
 0x8e3   : > { %2543 = vst [vmem:[%s2384_s20 + $0x38] sm:$0xff] %v2194_v46  ;;  %2202 = vst [vmem:[%s415_s13] sm:$0xff] %v2194_v46 }
 0x8e4   : > { %3827 = shalt.err (!%p3824_p3)
}
 0x8e5   : > { %s3828_s11 = scalar_lea.hbm %s4753_s17, 1024  ;;  %s3832_s15 = scalar_lea.hbm %s4838_s5, 2048 }
 0x8e6   : > { %p3829_p6 = scmp.ne.s32.totalorder %s4753_s17, %s3828_s11  ;;  %p3833_p10 = scmp.lt.u32.totalorder %s4753_s17, %s4838_s5 }
 0x8e7   : > { %p3834_p0 = scmp.lt.u32.totalorder %s3832_s15, %s3828_s11  ;;  %p3836_p2 = scmp.lt.u32.totalorder %s3828_s11, %s4753_s17 }
 0x8e8   : > { %p3830_p7 = pnand %p3829_p6, %p4881_p13 }
 0x8e9   : > { %p3835_p5 = por %p3834_p0, %p3833_p10 }
 0x8ea   : > { %p3831_p12 = pneg %p3830_p7 }
 0x8eb   : > { %p3837_p11 = por %p3836_p2, %p3835_p5 }
 0x8ed   : > { %p3838_p1 = pnand %p3837_p11, %p3831_p12 }
 0x8ef   : > { %3841 = shalt.err (!%p3838_p1)
}
 0x8f0   : > { %s3945_s26 = smov 128   ;;  %s3946_s13 = smov 256  }
 0x8f1   : > { %s3947_s28 = smov 8   ;;  %s2209_s19 = scalar_lea.sflag [#allocation12], %s4187_s1 }
 0x8f2   : > { %3562 = dma.vmem_to_hbm [thread:$0]  (%p4881_p13), %s4755_s8, 1024, %s4753_s17, %s2204_s27, %s3945_s26, %s3946_s13, %s3947_s28  }
 0x8f3   : > { %s3842_s9 = scalar_lea.vmem %s4762_s24, 128  ;;  %s3948_s7 = smov [#allocation11]  }
 0x8f4   : > { %p3843_p8 = scmp.ne.s32.totalorder %s4762_s24, %s3842_s9  ;;  %s3846_s18 = sshll.u32 %s3948_s7, 4  ;;  %s3847_s18 = int_to_ptr.vmem [resolvable:$false] %s3846_s18 }
 0x8f5   : > { %s3848_s14 = scalar_lea.vmem %s3847_s18, 256  ;;  %p3849_p3 = scmp.lt.s32.totalorder %s4762_s24, %s3847_s18 }
 0x8f6   : > { %p3844_p4 = pnand %p3843_p8, %p4881_p13  ;;  %p3850_p6 = scmp.lt.s32.totalorder %s3848_s14, %s3842_s9 }
 0x8f8   : > { %p3845_p9 = pneg %p3844_p4  ;;  %p3851_p7 = por %p3850_p6, %p3849_p3 }
 0x8fa   : > { %p3852_p12 = pnand %p3851_p7, %p3845_p9 }
 0x8fc   : > { %3855 = shalt.err (!%p3852_p12)
}
 0x8fd   : > { %s3856_s1 = scalar_lea.hbm %s4760_s23, 128  ;;  %s3860_s27 = scalar_lea.hbm %s4839_s6, 256 }
 0x8fe   : > { %p3857_p10 = scmp.ne.s32.totalorder %s4760_s23, %s3856_s1  ;;  %p3861_p2 = scmp.lt.u32.totalorder %s4760_s23, %s4839_s6 }
 0x8ff   : > { %p3862_p11 = scmp.lt.u32.totalorder %s3860_s27, %s3856_s1  ;;  %p3864_p8 = scmp.lt.u32.totalorder %s3856_s1, %s4760_s23 }
 0x900   : > { %p3858_p0 = pnand %p3857_p10, %p4881_p13 }
 0x901   : > { %p3863_p1 = por %p3862_p11, %p3861_p2 }
 0x902   : > { %p3859_p5 = pneg %p3858_p0 }
 0x903   : > { %p3865_p4 = por %p3864_p8, %p3863_p1 }
 0x905   : > { %p3866_p9 = pnand %p3865_p4, %p3859_p5 }
 0x907   : > { %3869 = shalt.err (!%p3866_p9)
}
 0x908   : > { %3563 = dma.vmem_to_hbm [thread:$0]  (%p4881_p13), %s4762_s24, 128, %s4760_s23, %s2209_s19  }
 0x909 PF: > { %s4882_s29 = sld [smem:[#allocation18_spill]]  ;;  %s2256_s15 = sand.u32 1, %s3912_s21  }
 0x90a   : > { %p4883_p3 = scmp.ne.s32.totalorder %s4863_s12, 0  ;;  %s2257_s20 = scalar_lea.sflag [#allocation6], %s2256_s15 }
 0x90f   : > { %p4884_p6 = scmp.ge.s32.totalorder %s4882_s29, 2 }
 0x911   : > { %p3577_p7 = pnand %p4884_p6, %p4883_p3 }
 0x913   : > { %3903 = dma.done.wait (!%p3577_p7), %s2257_s20, 1024  }
 0x914   : > { %3905 = vsyncadd (!%p3577_p7), %s2257_s20, 4294966272  ;;  %s2266_s30 = scalar_lea.sflag [#allocation12], %s2256_s15 }
 0x915   : > { %3907 = dma.done.wait (!%p3577_p7), %s2266_s30, 128  }
 0x916   : > { %3909 = vsyncadd (!%p3577_p7), %s2266_s30, 4294967168  ;;  %s29_s26 = sadd.s32 1, %s4882_s29   ;;  %s4885_s10 = sld [smem:[#allocation17_spill]] }
 0x917   : > { %p26_p12 = scmp.ge.s32.totalorder %s29_s26, 4   ;;  %s4886_s23 = sld [smem:[#allocation20_spill]] }
 0x918   : > { %s4887_s13 = sld [smem:[#allocation19_spill]]  ;;  %s4888_s21 = smov %s3916_s22 }
 0x919   : > { %s4890_s24 = smov %s3928_s25  ;;  %28 = sbr.rel (!%p26_p12) target bundleno = 12 (0xc), region = 156 }
 0x91c   : > { %s4889_s22 = smov %s4885_s10 }
 0x91e   : > { %s4891_s25 = smov %s4887_s13 }
 0x920   :  { %2271 = vsyncpa [#allocation5], 1 }
 0x921   :  { %2273 = vsyncpa [#allocation5 + $0x1], 1 }
 0x922   :  { %2274 = vsyncpa [#allocation8], 1 }
 0x923   :  { %2276 = vsyncpa [#allocation8 + $0x1], 1 }
 0x924   :  { %2277 = vsyncpa [#allocation6], 1 }
 0x925   :  { %2279 = vsyncpa [#allocation6 + $0x1], 1 }
 0x926   :  { %2280 = vsyncpa [#allocation12], 1 }
 0x927   :  { %2282 = vsyncpa [#allocation12 + $0x1], 1 }

</bundles_post_ra>
